<compile_context>
chip_gen: v5e
topology: v5e:2x2
jax: 0.10.0
libtpu: 0.0.40
codegen_flags: <defaults>
</compile_context>

<pallas_src>
import functools

import jax
import jax.numpy as jnp
from jax import lax
from jax.experimental import pallas as pl
from jax.experimental.pallas import tpu as pltpu


# ---------------------------------------------------------------------------
# chip / memory-model helpers
# ---------------------------------------------------------------------------
@functools.lru_cache(maxsize=1)
def _tpu_info():
    """(num_tensorcores, usable VMEM budget bytes) for tiling decisions."""
    num_tc, budget = 2, 40 << 20                   # conservative default (v7x)
    try:
        kind = jax.devices()[0].device_kind.lower()
    except Exception:
        return num_tc, budget
    if any(t in kind for t in ("v5 lite", "v5e", "v5litepod", "v6", "trillium")):
        return 1, 96 << 20                         # v5e / v6e: 1 TC, 128 MiB VMEM
    if any(t in kind for t in ("v2", "v3", "v4", "v5p", "v5")):
        return 2, 96 << 20                         # older 2-core chips, 128 MiB
    return num_tc, budget                          # v7x / unknown: 2 TC, 64 MiB


def _clamp_vmem(need, budget):
    return int(min(max(int(need), 8 << 20), budget))


def _fold_bn(bn, eps=1e-5):
    """Inference-mode BatchNorm folded into per-channel scale/shift (f32)."""
    s = bn["gamma"] / jnp.sqrt(bn["var"] + eps)
    return s, bn["beta"] - bn["mean"] * s


# ---------------------------------------------------------------------------
# Pallas kernels
# ---------------------------------------------------------------------------
def _matmul_epilogue_kernel(*refs, relu, has_res):
    """out = act((x @ w) * scale + shift [+ res]); single K block."""
    if has_res:
        x_ref, w_ref, sc_ref, sh_ref, res_ref, o_ref = refs
    else:
        x_ref, w_ref, sc_ref, sh_ref, o_ref = refs
        res_ref = None
    y = jnp.dot(x_ref[...], w_ref[...], preferred_element_type=jnp.float32)
    y = y * sc_ref[...] + sh_ref[...]
    if has_res:
        y = y + res_ref[...].astype(jnp.float32)
    if relu:
        y = jnp.maximum(y, 0.0)
    o_ref[...] = y.astype(o_ref.dtype)


def _matmul_acc_kernel(*refs, relu, has_res):
    """K-tiled insurance path: acc(k) += x @ w; epilogue at the last K step."""
    if has_res:
        x_ref, w_ref, sc_ref, sh_ref, res_ref, o_ref, acc_ref = refs
    else:
        x_ref, w_ref, sc_ref, sh_ref, o_ref, acc_ref = refs
        res_ref = None

    k = pl.program_id(2)

    @pl.when(k == 0)
    def _init():
        acc_ref[...] = jnp.zeros_like(acc_ref)

    acc_ref[...] += jnp.dot(x_ref[...], w_ref[...],
                            preferred_element_type=jnp.float32)

    @pl.when(k == pl.num_programs(2) - 1)
    def _finalize():
        y = acc_ref[...] * sc_ref[...] + sh_ref[...]
        if has_res:
            y = y + res_ref[...].astype(jnp.float32)
        if relu:
            y = jnp.maximum(y, 0.0)
        o_ref[...] = y.astype(o_ref.dtype)


def _conv3x3_kernel(*refs, taps, hw, wq, group_k, relu, n_imgs):
    """3x3 conv on VMEM-resident flattened image(s), row-batched taps.

    Each tap is one matmul with ALL hw = Ho*Wo output rows as the MXU LHS:
      lhs = img[base : base + hw, :]   (contiguous flat slab)
    Border columns whose flat slab "wraps" into the neighbouring row are
    zeroed with an iota mask.  taps = tuple of (img_index, base, mask_kind)
    with mask_kind 0 = none, 1 = zero where col==0, 2 = zero where col==wq-1.
    """
    img_refs = refs[:n_imgs]
    w_ref, sc_ref, sh_ref, o_ref, acc_ref = refs[n_imgs:]

    need_l = any(m == 1 for (_, _, m) in taps)
    need_r = any(m == 2 for (_, _, m) in taps)
    lmask = rmask = None
    if need_l or need_r:
        col = lax.broadcasted_iota(jnp.int32, (hw, 1), 0) % wq
        dt = img_refs[0].dtype
        if need_l:
            lmask = (col != 0).astype(dt)
        if need_r:
            rmask = (col != wq - 1).astype(dt)

    for t, (img_i, base, mkind) in enumerate(taps):
        lhs = img_refs[img_i][0, base:base + hw, :]
        if mkind == 1:
            lhs = lhs * lmask
        elif mkind == 2:
            lhs = lhs * rmask
        contrib = jnp.dot(lhs, w_ref[t * group_k:(t + 1) * group_k, :],
                          preferred_element_type=jnp.float32)
        if t == 0:
            acc_ref[...] = contrib
        else:
            acc_ref[...] += contrib

    y = acc_ref[...] * sc_ref[...] + sh_ref[...]
    if relu:
        y = jnp.maximum(y, 0.0)
    o_ref[0] = y.astype(o_ref.dtype)


# ---------------------------------------------------------------------------
# Pallas wrappers
# ---------------------------------------------------------------------------
def fused_matmul(x, w, scale, shift, *, residual=None, relu=False,
                 out_dtype=jnp.bfloat16, num_tc=1, vmem_budget=32 << 20):
    """out = act((x @ w) * scale + shift [+ residual]); bf16 in, f32 epilogue."""
    M, K = x.shape
    K2, Nc = w.shape
    assert K == K2
    has_res = residual is not None
    ob = jnp.dtype(out_dtype).itemsize

    # Output lane tile (full dim when Nc is not a multiple of 128).
    if Nc % 128 == 0:
        tn = 256 if Nc % 256 == 0 else 128
    else:
        tn = Nc

    # K tiling only as insurance for very large K.
    if K <= 2048:
        tk = K
    else:
        tk = next((c for c in (2048, 1024, 512, 256) if K % c == 0), K)
    nk = K // tk

    def need(tm_, tn_):
        n = 2 * (tm_ * tk * 2 + tk * tn_ * 2 + 2 * tn_ * 4 + tm_ * tn_ * ob)
        if has_res:
            n += 2 * tm_ * tn_ * 2
        if nk > 1:
            n += tm_ * tn_ * 4
        return n + (4 << 20)

    cands = [c for c in (1024, 512, 256, 128, 64, 32, 16, 8) if M % c == 0]
    if not cands:
        tm = M
    else:
        tm = next((c for c in cands if need(c, tn) <= vmem_budget), cands[-1])

    # Split tiles for megacore sharding only on chips with >= 2 TensorCores.
    if num_tc >= 2 and (M // tm) * (Nc // tn) < 2:
        if tn > 128:
            tn //= 2
        elif tm % 2 == 0 and tm > 8:
            tm //= 2

    vmem = _clamp_vmem(need(tm, tn), vmem_budget)
    args = [x, w, scale, shift] + ([residual] if has_res else [])

    if nk == 1:
        in_specs = [
            pl.BlockSpec((tm, K), lambda i, j: (i, 0)),
            pl.BlockSpec((K, tn), lambda i, j: (0, j)),
            pl.BlockSpec((1, tn), lambda i, j: (0, j)),
            pl.BlockSpec((1, tn), lambda i, j: (0, j)),
        ]
        if has_res:
            in_specs.append(pl.BlockSpec((tm, tn), lambda i, j: (i, j)))
        return pl.pallas_call(
            functools.partial(_matmul_epilogue_kernel, relu=relu,
                              has_res=has_res),
            out_shape=jax.ShapeDtypeStruct((M, Nc), out_dtype),
            grid_spec=pltpu.PrefetchScalarGridSpec(
                num_scalar_prefetch=0,
                grid=(M // tm, Nc // tn),
                in_specs=in_specs,
                out_specs=pl.BlockSpec((tm, tn), lambda i, j: (i, j)),
            ),
            compiler_params=pltpu.CompilerParams(
                dimension_semantics=("parallel", "parallel"),
                vmem_limit_bytes=vmem,
            ),
        )(*args)

    # K-tiled accumulator path (not hit by this block's layer sizes).
    in_specs = [
        pl.BlockSpec((tm, tk), lambda i, j, k: (i, k)),
        pl.BlockSpec((tk, tn), lambda i, j, k: (k, j)),
        pl.BlockSpec((1, tn), lambda i, j, k: (0, j)),
        pl.BlockSpec((1, tn), lambda i, j, k: (0, j)),
    ]
    if has_res:
        in_specs.append(pl.BlockSpec((tm, tn), lambda i, j, k: (i, j)))
    return pl.pallas_call(
        functools.partial(_matmul_acc_kernel, relu=relu, has_res=has_res),
        out_shape=jax.ShapeDtypeStruct((M, Nc), out_dtype),
        grid_spec=pltpu.PrefetchScalarGridSpec(
            num_scalar_prefetch=0,
            grid=(M // tm, Nc // tn, nk),
            in_specs=in_specs,
            out_specs=pl.BlockSpec((tm, tn), lambda i, j, k: (i, j)),
            scratch_shapes=[pltpu.VMEM((tm, tn), jnp.float32)],
        ),
        compiler_params=pltpu.CompilerParams(
            dimension_semantics=("parallel", "parallel", "arbitrary"),
            vmem_limit_bytes=vmem,
        ),
    )(*args)


def conv1x1_bn_act(x, w, scale, shift, *, relu, residual=None,
                   out_dtype=jnp.bfloat16, num_tc=1, vmem_budget=32 << 20):
    """1x1 conv + folded BN + optional residual + ReLU (NHWC activations)."""
    N, H, W, C = x.shape
    cout = w.shape[1]
    xm = x.reshape(N * H * W, C)
    res = None
    if residual is not None:
        assert residual.shape[-1] == cout
        res = residual.reshape(N * H * W, cout)
    out = fused_matmul(xm, w, scale, shift, residual=res, relu=relu,
                       out_dtype=out_dtype, num_tc=num_tc,
                       vmem_budget=vmem_budget)
    return out.reshape(N, H, W, cout)


def conv3x3_bn_act(h, wmat, scale, shift, *, stride, relu,
                   out_dtype=jnp.bfloat16, num_tc=1, vmem_budget=32 << 20):
    """3x3 conv (pad=1, stride 1 or 2) + folded BN + ReLU, row-batched taps."""
    N, H, W, C = h.shape
    cout = wmat.shape[1]

    if stride == 1:
        Ho, Wo = H, W
        wq = W
        group_k = C
        # Pad H by (2, 2): the top slack also covers flat-slab front offsets.
        img0 = jnp.pad(h, ((0, 0), (2, 2), (0, 0), (0, 0)))
        img0 = img0.reshape(N, (H + 4) * W, C)
        imgs = [img0]
        taps = tuple(
            (0, (kh + 1) * W + kw - 1, 1 if kw == 0 else (2 if kw == 2 else 0))
            for kh in range(3) for kw in range(3))
    elif stride == 2:
        assert H % 2 == 0 and W % 2 == 0, "stride-2 3x3 conv needs even H, W"
        Ho, Wo = H // 2, W // 2
        wq = Wo
        group_k = 2 * C
        # Column-phase fold (wide pixels of 2C channels) + row-phase split.
        xw = h.reshape(N, H, Wo, 2 * C)
        even = xw[:, 0::2].reshape(N, Ho * Wo, 2 * C)          # rows 2*ho
        odd = jnp.concatenate(                                 # rows 2*ho - 1
            [jnp.zeros((N, 1, Wo, 2 * C), h.dtype), xw[:, 1::2]], axis=1
        ).reshape(N, (Ho + 1) * Wo, 2 * C)
        even = jnp.pad(even, ((0, 0), (1, 1), (0, 0)))
        odd = jnp.pad(odd, ((0, 0), (1, 1), (0, 0)))
        imgs = [odd, even]
        taps = ((0, 0, 1), (0, 1, 0),            # kh = 0 : rows 2*ho - 1
                (1, 0, 1), (1, 1, 0),            # kh = 1 : rows 2*ho
                (0, Wo, 1), (0, Wo + 1, 0))      # kh = 2 : rows 2*ho + 1
    else:
        raise NotImplementedError("stride must be 1 or 2")

    hw = Ho * Wo
    assert wmat.shape[0] == len(taps) * group_k

    if cout % 128 == 0:
        tn = 256 if cout % 256 == 0 else 128
    else:
        tn = cout
    n_ct = cout // tn
    grid = (N, n_ct)          # cout tile innermost: image stays VMEM-resident

    ob = jnp.dtype(out_dtype).itemsize
    img_bytes = sum(int(im.shape[1]) * int(im.shape[2]) * im.dtype.itemsize
                    for im in imgs)
    need = (2 * (img_bytes + wmat.shape[0] * tn * 2 + 2 * tn * 4 + hw * tn * ob)
            + 2 * hw * tn * 4 + (4 << 20))
    vmem = _clamp_vmem(need, vmem_budget)

    in_specs = [pl.BlockSpec((1,) + tuple(im.shape[1:]), lambda n, j: (n, 0, 0))
                for im in imgs]
    in_specs += [
        pl.BlockSpec((wmat.shape[0], tn), lambda n, j: (0, j)),
        pl.BlockSpec((1, tn), lambda n, j: (0, j)),
        pl.BlockSpec((1, tn), lambda n, j: (0, j)),
    ]

    kern = functools.partial(_conv3x3_kernel, taps=taps, hw=hw, wq=wq,
                             group_k=group_k, relu=relu, n_imgs=len(imgs))
    out = pl.pallas_call(
        kern,
        out_shape=jax.ShapeDtypeStruct((N, hw, cout), out_dtype),
        grid_spec=pltpu.PrefetchScalarGridSpec(
            num_scalar_prefetch=0,
            grid=grid,
            in_specs=in_specs,
            out_specs=pl.BlockSpec((1, hw, tn), lambda n, j: (n, 0, j)),
            scratch_shapes=[pltpu.VMEM((hw, tn), jnp.float32)],
        ),
        compiler_params=pltpu.CompilerParams(
            dimension_semantics=("parallel", "parallel"),
            vmem_limit_bytes=vmem,
        ),
    )(*imgs, wmat, scale, shift)
    return out.reshape(N, Ho, Wo, cout)


# ---------------------------------------------------------------------------
# One-time parameter packing (hoisted out of the jitted forward)
# ---------------------------------------------------------------------------
def pack_params(params, stride):
    """BN fold, bf16 cast and 3x3 tap stacking, done once at load time."""
    def sb(bn):
        s, b = _fold_bn(bn)
        return (s.reshape(1, -1).astype(jnp.float32),
                b.reshape(1, -1).astype(jnp.float32))

    p = {}
    p["w1"] = params["conv1_w"].astype(jnp.bfloat16)
    p["s1"], p["b1"] = sb(params["bn1"])

    w4 = params["conv2_w"]                              # (3, 3, C, C2)
    C, C2 = w4.shape[2], w4.shape[3]
    if stride == 1:
        w2 = w4.reshape(9 * C, C2)                      # tap order (kh, kw)
    else:
        blocks = []
        for kh in range(3):
            blocks.append(jnp.concatenate(              # "A": left wide pixel
                [jnp.zeros((C, C2), w4.dtype), w4[kh, 0]], axis=0))
            blocks.append(jnp.concatenate(              # "B": centre wide pixel
                [w4[kh, 1], w4[kh, 2]], axis=0))
        w2 = jnp.concatenate(blocks, axis=0)            # (12*C, C2)
    p["w2"] = w2.astype(jnp.bfloat16)
    p["s2"], p["b2"] = sb(params["bn2"])

    p["w3"] = params["conv3_w"].astype(jnp.bfloat16)
    p["s3"], p["b3"] = sb(params["bn3"])

    if "down_w" in params:
        p["wd"] = params["down_w"].astype(jnp.bfloat16)
        p["sd"], p["bd"] = sb(params["down_bn"])
    return p


# ---------------------------------------------------------------------------
# Block forward (kernel path)
# ---------------------------------------------------------------------------
@functools.partial(jax.jit, static_argnames=("stride",))
def quant_bottleneck_forward(packed, x_nchw, *, stride):
    num_tc, budget = _tpu_info()
    hw_kw = dict(num_tc=num_tc, vmem_budget=budget)

    x = jnp.transpose(x_nchw, (0, 2, 3, 1)).astype(jnp.bfloat16)   # NCHW -> NHWC

    h = conv1x1_bn_act(x, packed["w1"], packed["s1"], packed["b1"],
                       relu=True, **hw_kw)
    h = conv3x3_bn_act(h, packed["w2"], packed["s2"], packed["b2"],
                       stride=stride, relu=True, **hw_kw)

    cout3 = packed["w3"].shape[1]
    if "wd" in packed:
        # TODO(synk): fold the stride-2 subsample into the matmul BlockSpec
        # (phase-split view) instead of this strided-slice copy.
        x_ds = x if stride == 1 else x[:, ::stride, ::stride, :]
        ident = conv1x1_bn_act(x_ds, packed["wd"], packed["sd"], packed["bd"],
                               relu=False, **hw_kw)
    else:
        ident = x
        assert ident.shape[-1] == cout3

    # bn3(conv3(h)) + identity, then relu_out -> fused into one kernel epilogue.
    out = conv1x1_bn_act(h, packed["w3"], packed["s3"], packed["b3"],
                         relu=True, residual=ident, out_dtype=jnp.float32,
                         **hw_kw)
    return jnp.transpose(out, (0, 3, 1, 2))                        # back to NCHW


# ---------------------------------------------------------------------------
# Pure-JAX reference (same bf16 rounding points, f32 math)
# ---------------------------------------------------------------------------
def reference_forward(params, x_nchw, stride):
    f32 = jnp.float32
    bf = lambda a: a.astype(jnp.bfloat16).astype(f32)

    def conv(h, w4, s, pad):
        return lax.conv_general_dilated(
            h, bf(w4), window_strides=(s, s), padding=pad,
            dimension_numbers=("NHWC", "HWIO", "NHWC"))

    def bn(h, bnp):
        s, b = _fold_bn(bnp)
        return h * s.reshape(1, 1, 1, -1) + b.reshape(1, 1, 1, -1)

    def as4d(w2):
        return w2.reshape(1, 1, *w2.shape)

    x = bf(jnp.transpose(x_nchw, (0, 2, 3, 1)).astype(f32))
    h = bf(jnp.maximum(bn(conv(x, as4d(params["conv1_w"]), 1, "VALID"),
                          params["bn1"]), 0.0))
    h = bf(jnp.maximum(bn(conv(h, params["conv2_w"], stride, ((1, 1), (1, 1))),
                          params["bn2"]), 0.0))
    if "down_w" in params:
        ident = bf(bn(conv(x, as4d(params["down_w"]), stride, "VALID"),
                      params["down_bn"]))
    else:
        ident = x
    out = bn(conv(h, as4d(params["conv3_w"]), 1, "VALID"), params["bn3"])
    out = jnp.maximum(out + ident, 0.0)
    return jnp.transpose(out, (0, 3, 1, 2))


# ---------------------------------------------------------------------------
# Parameters (deterministic init, mirroring the module's fresh-init state)
# ---------------------------------------------------------------------------
def _bn_init(c):
    return {"gamma": jnp.ones((c,), jnp.float32),
            "beta": jnp.zeros((c,), jnp.float32),
            "mean": jnp.zeros((c,), jnp.float32),
            "var": jnp.ones((c,), jnp.float32)}


def make_params(key, in_planes, planes, stride):
    expansion = 4
    ks = jax.random.split(key, 4)

    def kaiming(k, shape, fan_in):
        return jax.random.normal(k, shape, jnp.float32) * ((2.0 / fan_in) ** 0.5)

    p = {
        "conv1_w": kaiming(ks[0], (in_planes, planes), in_planes),
        "bn1": _bn_init(planes),
        "conv2_w": kaiming(ks[1], (3, 3, planes, planes), 9 * planes),
        "bn2": _bn_init(planes),
        "conv3_w": kaiming(ks[2], (planes, expansion * planes), planes),
        "bn3": _bn_init(expansion * planes),
    }
    if stride != 1 or in_planes != expansion * planes:
        p["down_w"] = kaiming(ks[3], (in_planes, expansion * planes), in_planes)
        p["down_bn"] = _bn_init(expansion * planes)
    return p


# ---------------------------------------------------------------------------
if __name__ == "__main__":
    key = jax.random.PRNGKey(0)
    pkey, xkey = jax.random.split(key)

    in_planes, planes, stride = 64, 64, 2          # downsample path is exercised
    params = make_params(pkey, in_planes, planes, stride)
    x = jax.random.normal(xkey, (2, in_planes, 16, 16), dtype=jnp.float32)

    packed = pack_params(params, stride)           # one-time weight packing
    out = jax.block_until_ready(
        quant_bottleneck_forward(packed, x, stride=stride))
    ref = jax.block_until_ready(reference_forward(params, x, stride))

    assert out.shape == (2, 4 * planes, 8, 8), out.shape
    assert bool(jnp.all(jnp.isfinite(out)))
    err = float(jnp.max(jnp.abs(out - ref)))
    tol = 5e-2 * (float(jnp.max(jnp.abs(ref))) + 1.0)
    assert err <= tol, f"kernel vs reference mismatch: max abs err {err} > {tol}"
    print("KERNEL_OK")
</pallas_src>

<mosaic_0001>
module attributes {stable_mosaic.version = 11 : i64} {
  func.func @_matmul_epilogue_kernel(%arg0: i32, %arg1: i32, %arg2: memref<256x64xbf16, #tpu.memory_space<vmem>>, %arg3: memref<64x64xbf16, #tpu.memory_space<vmem>>, %arg4: memref<1x64xf32, #tpu.memory_space<vmem>>, %arg5: memref<1x64xf32, #tpu.memory_space<vmem>>, %arg6: memref<256x64xbf16, #tpu.memory_space<vmem>>) attributes {dimension_semantics = [#tpu.dimension_semantics<parallel>, #tpu.dimension_semantics<parallel>], iteration_bounds = array<i64: 2, 1>, scalar_prefetch = 0 : i64, scratch_operands = 0 : i64, tpu.core_type = #tpu.core_type<tc>, window_params = [{transform_indices = @transform_0, window_bounds = array<i64: 256, 64>}, {transform_indices = @transform_1, window_bounds = array<i64: 64, 64>}, {transform_indices = @transform_2, window_bounds = array<i64: 1, 64>}, {transform_indices = @transform_3, window_bounds = array<i64: 1, 64>}, {transform_indices = @transform_4, window_bounds = array<i64: 256, 64>}]} {
    %c0 = arith.constant 0 : index
    %c0_0 = arith.constant 0 : index
    %0 = vector.load %arg2[%c0, %c0_0] : memref<256x64xbf16, #tpu.memory_space<vmem>>, vector<256x64xbf16>
    %c0_1 = arith.constant 0 : index
    %c0_2 = arith.constant 0 : index
    %1 = vector.load %arg3[%c0_1, %c0_2] : memref<64x64xbf16, #tpu.memory_space<vmem>>, vector<64x64xbf16>
    %cst = arith.constant dense<0.000000e+00> : vector<256x64xf32>
    %2 = tpu.matmul %0, %1, %cst {dimension_numbers = #tpu.dot_dimension_numbers<[1], [0], [0], [1], [0, 0, 1, 1], [], []>} : vector<256x64xbf16>, vector<64x64xbf16>, vector<256x64xf32> -> vector<256x64xf32>
    %c0_3 = arith.constant 0 : index
    %c0_4 = arith.constant 0 : index
    %3 = vector.load %arg4[%c0_3, %c0_4] : memref<1x64xf32, #tpu.memory_space<vmem>>, vector<1x64xf32>
    %4 = vector.broadcast %3 : vector<1x64xf32> to vector<256x64xf32>
    %5 = arith.mulf %2, %4 : vector<256x64xf32>
    %c0_5 = arith.constant 0 : index
    %c0_6 = arith.constant 0 : index
    %6 = vector.load %arg5[%c0_5, %c0_6] : memref<1x64xf32, #tpu.memory_space<vmem>>, vector<1x64xf32>
    %7 = vector.broadcast %6 : vector<1x64xf32> to vector<256x64xf32>
    %8 = arith.addf %5, %7 : vector<256x64xf32>
    %cst_7 = arith.constant 0.000000e+00 : f32
    %9 = vector.broadcast %cst_7 : f32 to vector<256x64xf32>
    %10 = arith.maximumf %8, %9 : vector<256x64xf32>
    %11 = arith.truncf %10 : vector<256x64xf32> to vector<256x64xbf16>
    %c0_8 = arith.constant 0 : index
    %c0_9 = arith.constant 0 : index
    %12 = vector.load %arg6[%c0_8, %c0_9] : memref<256x64xbf16, #tpu.memory_space<vmem>>, vector<256x64xbf16>
    tpu.vector_store %arg6[%c0_8, %c0_9], %11 {strides = array<i32>} : memref<256x64xbf16, #tpu.memory_space<vmem>>, vector<256x64xbf16>,
    return
  }
  func.func @transform_0(%arg0: i32, %arg1: i32) -> (i32, i32) {
    %c0_i32 = arith.constant 0 : i32
    %c0_i32_0 = arith.constant 0 : i32
    return %arg0, %c0_i32 : i32, i32
  }
  func.func @transform_1(%arg0: i32, %arg1: i32) -> (i32, i32) {
    %c0_i32 = arith.constant 0 : i32
    %c0_i32_0 = arith.constant 0 : i32
    return %c0_i32, %arg1 : i32, i32
  }
  func.func @transform_2(%arg0: i32, %arg1: i32) -> (i32, i32) {
    %c0_i32 = arith.constant 0 : i32
    %c0_i32_0 = arith.constant 0 : i32
    return %c0_i32, %arg1 : i32, i32
  }
  func.func @transform_3(%arg0: i32, %arg1: i32) -> (i32, i32) {
    %c0_i32 = arith.constant 0 : i32
    %c0_i32_0 = arith.constant 0 : i32
    return %c0_i32, %arg1 : i32, i32
  }
  func.func @transform_4(%arg0: i32, %arg1: i32) -> (i32, i32) {
    %c0_i32 = arith.constant 0 : i32
    return %arg0, %arg1 : i32, i32
  }
}

module attributes {stable_mosaic.version = 11 : i64} {
  func.func @_conv3x3_kernel(%arg0: i32, %arg1: i32, %arg2: memref<1x74x128xbf16, #tpu.memory_space<vmem>>, %arg3: memref<1x66x128xbf16, #tpu.memory_space<vmem>>, %arg4: memref<768x64xbf16, #tpu.memory_space<vmem>>, %arg5: memref<1x64xf32, #tpu.memory_space<vmem>>, %arg6: memref<1x64xf32, #tpu.memory_space<vmem>>, %arg7: memref<1x64x64xbf16, #tpu.memory_space<vmem>>, %arg8: memref<64x64xf32, #tpu.memory_space<vmem>>) attributes {dimension_semantics = [#tpu.dimension_semantics<parallel>, #tpu.dimension_semantics<parallel>], iteration_bounds = array<i64: 2, 1>, scalar_prefetch = 0 : i64, scratch_operands = 1 : i64, tpu.core_type = #tpu.core_type<tc>, window_params = [{transform_indices = @transform_0, window_bounds = array<i64: 1, 74, 128>}, {transform_indices = @transform_1, window_bounds = array<i64: 1, 66, 128>}, {transform_indices = @transform_2, window_bounds = array<i64: 768, 64>}, {transform_indices = @transform_3, window_bounds = array<i64: 1, 64>}, {transform_indices = @transform_4, window_bounds = array<i64: 1, 64>}, {transform_indices = @transform_5, window_bounds = array<i64: 1, 64, 64>}]} {
    %0 = tpu.iota {dimensions = array<i32: 0>} : vector<64x1xi32>
    %c8_i32 = arith.constant 8 : i32
    %c0_i32 = arith.constant 0 : i32
    %1 = arith.cmpi eq, %c8_i32, %c0_i32 : i32
    %c1_i32 = arith.constant 1 : i32
    %2 = arith.select %1, %c1_i32, %c8_i32 : i32
    %3 = vector.broadcast %2 : i32 to vector<64x1xi32>
    %4 = arith.remsi %0, %3 : vector<64x1xi32>
    %c0_i32_0 = arith.constant 0 : i32
    %5 = vector.broadcast %c0_i32_0 : i32 to vector<64x1xi32>
    %6 = arith.cmpi ne, %4, %5 : vector<64x1xi32>
    %c0_i32_1 = arith.constant 0 : i32
    %7 = vector.broadcast %c0_i32_1 : i32 to vector<64x1xi32>
    %8 = arith.cmpi slt, %4, %7 : vector<64x1xi32>
    %c0_i32_2 = arith.constant 0 : i32
    %9 = arith.cmpi slt, %2, %c0_i32_2 : i32
    %10 = vector.broadcast %9 : i1 to vector<64x1xi1>
    %11 = vector.broadcast %10 : vector<64x1xi1> to vector<64x1xi1>
    %12 = arith.xori %8, %11 : vector<64x1xi1>
    %13 = arith.andi %12, %6 : vector<64x1xi1>
    %14 = vector.broadcast %2 : i32 to vector<64x1xi32>
    %15 = arith.addi %4, %14 : vector<64x1xi32>
    %16 = arith.select %13, %15, %4 : vector<64x1xi1>, vector<64x1xi32>
    %c0_i32_3 = arith.constant 0 : i32
    %17 = vector.broadcast %c0_i32_3 : i32 to vector<64x1xi32>
    %18 = arith.cmpi ne, %16, %17 : vector<64x1xi32>
    %19 = arith.extui %18 : vector<64x1xi1> to vector<64x1xi32>
    %20 = arith.sitofp %19 : vector<64x1xi32> to vector<64x1xf32>
    %21 = arith.truncf %20 : vector<64x1xf32> to vector<64x1xbf16>
    %c0 = arith.constant 0 : index
    %c0_4 = arith.constant 0 : index
    %c0_5 = arith.constant 0 : index
    %22 = vector.load %arg2[%c0, %c0_4, %c0_5] : memref<1x74x128xbf16, #tpu.memory_space<vmem>>, vector<1x64x128xbf16>
    %23 = vector.shape_cast %22 : vector<1x64x128xbf16> to vector<64x128xbf16>
    %24 = vector.broadcast %21 : vector<64x1xbf16> to vector<64x128xbf16>
    %25 = arith.mulf %23, %24 : vector<64x128xbf16>
    %c0_6 = arith.constant 0 : index
    %c0_7 = arith.constant 0 : index
    %26 = vector.load %arg4[%c0_6, %c0_7] : memref<768x64xbf16, #tpu.memory_space<vmem>>, vector<128x64xbf16>
    %cst = arith.constant dense<0.000000e+00> : vector<64x64xf32>
    %27 = tpu.matmul %25, %26, %cst {dimension_numbers = #tpu.dot_dimension_numbers<[1], [0], [0], [1], [0, 0, 1, 1], [], []>} : vector<64x128xbf16>, vector<128x64xbf16>, vector<64x64xf32> -> vector<64x64xf32>
    %c0_8 = arith.constant 0 : index
    %c0_9 = arith.constant 0 : index
    %28 = vector.load %arg8[%c0_8, %c0_9] : memref<64x64xf32, #tpu.memory_space<vmem>>, vector<64x64xf32>
    tpu.vector_store %arg8[%c0_8, %c0_9], %27 {strides = array<i32>} : memref<64x64xf32, #tpu.memory_space<vmem>>, vector<64x64xf32>,
    %c0_10 = arith.constant 0 : index
    %c1 = arith.constant 1 : index
    %c0_11 = arith.constant 0 : index
    %29 = vector.load %arg2[%c0_10, %c1, %c0_11] : memref<1x74x128xbf16, #tpu.memory_space<vmem>>, vector<1x64x128xbf16>
    %30 = vector.shape_cast %29 : vector<1x64x128xbf16> to vector<64x128xbf16>
    %c128 = arith.constant 128 : index
    %c0_12 = arith.constant 0 : index
    %31 = vector.load %arg4[%c128, %c0_12] : memref<768x64xbf16, #tpu.memory_space<vmem>>, vector<128x64xbf16>
    %cst_13 = arith.constant dense<0.000000e+00> : vector<64x64xf32>
    %32 = tpu.matmul %30, %31, %cst_13 {dimension_numbers = #tpu.dot_dimension_numbers<[1], [0], [0], [1], [0, 0, 1, 1], [], []>} : vector<64x128xbf16>, vector<128x64xbf16>, vector<64x64xf32> -> vector<64x64xf32>
    %c0_14 = arith.constant 0 : index
    %c0_15 = arith.constant 0 : index
    %33 = vector.load %arg8[%c0_14, %c0_15] : memref<64x64xf32, #tpu.memory_space<vmem>>, vector<64x64xf32>
    %34 = arith.addf %33, %32 : vector<64x64xf32>
    %c0_16 = arith.constant 0 : index
    %c0_17 = arith.constant 0 : index
    %35 = vector.load %arg8[%c0_16, %c0_17] : memref<64x64xf32, #tpu.memory_space<vmem>>, vector<64x64xf32>
    tpu.vector_store %arg8[%c0_16, %c0_17], %34 {strides = array<i32>} : memref<64x64xf32, #tpu.memory_space<vmem>>, vector<64x64xf32>,
    %c0_18 = arith.constant 0 : index
    %c0_19 = arith.constant 0 : index
    %c0_20 = arith.constant 0 : index
    %36 = vector.load %arg3[%c0_18, %c0_19, %c0_20] : memref<1x66x128xbf16, #tpu.memory_space<vmem>>, vector<1x64x128xbf16>
    %37 = vector.shape_cast %36 : vector<1x64x128xbf16> to vector<64x128xbf16>
    %38 = vector.broadcast %21 : vector<64x1xbf16> to vector<64x128xbf16>
    %39 = arith.mulf %37, %38 : vector<64x128xbf16>
    %c256 = arith.constant 256 : index
    %c0_21 = arith.constant 0 : index
    %40 = vector.load %arg4[%c256, %c0_21] : memref<768x64xbf16, #tpu.memory_space<vmem>>, vector<128x64xbf16>
    %cst_22 = arith.constant dense<0.000000e+00> : vector<64x64xf32>
    %41 = tpu.matmul %39, %40, %cst_22 {dimension_numbers = #tpu.dot_dimension_numbers<[1], [0], [0], [1], [0, 0, 1, 1], [], []>} : vector<64x128xbf16>, vector<128x64xbf16>, vector<64x64xf32> -> vector<64x64xf32>
    %c0_23 = arith.constant 0 : index
    %c0_24 = arith.constant 0 : index
    %42 = vector.load %arg8[%c0_23, %c0_24] : memref<64x64xf32, #tpu.memory_space<vmem>>, vector<64x64xf32>
    %43 = arith.addf %42, %41 : vector<64x64xf32>
    %c0_25 = arith.constant 0 : index
    %c0_26 = arith.constant 0 : index
    %44 = vector.load %arg8[%c0_25, %c0_26] : memref<64x64xf32, #tpu.memory_space<vmem>>, vector<64x64xf32>
    tpu.vector_store %arg8[%c0_25, %c0_26], %43 {strides = array<i32>} : memref<64x64xf32, #tpu.memory_space<vmem>>, vector<64x64xf32>,
    %c0_27 = arith.constant 0 : index
    %c1_28 = arith.constant 1 : index
    %c0_29 = arith.constant 0 : index
    %45 = vector.load %arg3[%c0_27, %c1_28, %c0_29] : memref<1x66x128xbf16, #tpu.memory_space<vmem>>, vector<1x64x128xbf16>
    %46 = vector.shape_cast %45 : vector<1x64x128xbf16> to vector<64x128xbf16>
    %c384 = arith.constant 384 : index
    %c0_30 = arith.constant 0 : index
    %47 = vector.load %arg4[%c384, %c0_30] : memref<768x64xbf16, #tpu.memory_space<vmem>>, vector<128x64xbf16>
    %cst_31 = arith.constant dense<0.000000e+00> : vector<64x64xf32>
    %48 = tpu.matmul %46, %47, %cst_31 {dimension_numbers = #tpu.dot_dimension_numbers<[1], [0], [0], [1], [0, 0, 1, 1], [], []>} : vector<64x128xbf16>, vector<128x64xbf16>, vector<64x64xf32> -> vector<64x64xf32>
    %c0_32 = arith.constant 0 : index
    %c0_33 = arith.constant 0 : index
    %49 = vector.load %arg8[%c0_32, %c0_33] : memref<64x64xf32, #tpu.memory_space<vmem>>, vector<64x64xf32>
    %50 = arith.addf %49, %48 : vector<64x64xf32>
    %c0_34 = arith.constant 0 : index
    %c0_35 = arith.constant 0 : index
    %51 = vector.load %arg8[%c0_34, %c0_35] : memref<64x64xf32, #tpu.memory_space<vmem>>, vector<64x64xf32>
    tpu.vector_store %arg8[%c0_34, %c0_35], %50 {strides = array<i32>} : memref<64x64xf32, #tpu.memory_space<vmem>>, vector<64x64xf32>,
    %c0_36 = arith.constant 0 : index
    %c8 = arith.constant 8 : index
    %c0_37 = arith.constant 0 : index
    %52 = vector.load %arg2[%c0_36, %c8, %c0_37] : memref<1x74x128xbf16, #tpu.memory_space<vmem>>, vector<1x64x128xbf16>
    %53 = vector.shape_cast %52 : vector<1x64x128xbf16> to vector<64x128xbf16>
    %54 = vector.broadcast %21 : vector<64x1xbf16> to vector<64x128xbf16>
    %55 = arith.mulf %53, %54 : vector<64x128xbf16>
    %c512 = arith.constant 512 : index
    %c0_38 = arith.constant 0 : index
    %56 = vector.load %arg4[%c512, %c0_38] : memref<768x64xbf16, #tpu.memory_space<vmem>>, vector<128x64xbf16>
    %cst_39 = arith.constant dense<0.000000e+00> : vector<64x64xf32>
    %57 = tpu.matmul %55, %56, %cst_39 {dimension_numbers = #tpu.dot_dimension_numbers<[1], [0], [0], [1], [0, 0, 1, 1], [], []>} : vector<64x128xbf16>, vector<128x64xbf16>, vector<64x64xf32> -> vector<64x64xf32>
    %c0_40 = arith.constant 0 : index
    %c0_41 = arith.constant 0 : index
    %58 = vector.load %arg8[%c0_40, %c0_41] : memref<64x64xf32, #tpu.memory_space<vmem>>, vector<64x64xf32>
    %59 = arith.addf %58, %57 : vector<64x64xf32>
    %c0_42 = arith.constant 0 : index
    %c0_43 = arith.constant 0 : index
    %60 = vector.load %arg8[%c0_42, %c0_43] : memref<64x64xf32, #tpu.memory_space<vmem>>, vector<64x64xf32>
    tpu.vector_store %arg8[%c0_42, %c0_43], %59 {strides = array<i32>} : memref<64x64xf32, #tpu.memory_space<vmem>>, vector<64x64xf32>,
    %c0_44 = arith.constant 0 : index
    %c9 = arith.constant 9 : index
    %c0_45 = arith.constant 0 : index
    %61 = vector.load %arg2[%c0_44, %c9, %c0_45] : memref<1x74x128xbf16, #tpu.memory_space<vmem>>, vector<1x64x128xbf16>
    %62 = vector.shape_cast %61 : vector<1x64x128xbf16> to vector<64x128xbf16>
    %c640 = arith.constant 640 : index
    %c0_46 = arith.constant 0 : index
    %63 = vector.load %arg4[%c640, %c0_46] : memref<768x64xbf16, #tpu.memory_space<vmem>>, vector<128x64xbf16>
    %cst_47 = arith.constant dense<0.000000e+00> : vector<64x64xf32>
    %64 = tpu.matmul %62, %63, %cst_47 {dimension_numbers = #tpu.dot_dimension_numbers<[1], [0], [0], [1], [0, 0, 1, 1], [], []>} : vector<64x128xbf16>, vector<128x64xbf16>, vector<64x64xf32> -> vector<64x64xf32>
    %c0_48 = arith.constant 0 : index
    %c0_49 = arith.constant 0 : index
    %65 = vector.load %arg8[%c0_48, %c0_49] : memref<64x64xf32, #tpu.memory_space<vmem>>, vector<64x64xf32>
    %66 = arith.addf %65, %64 : vector<64x64xf32>
    %c0_50 = arith.constant 0 : index
    %c0_51 = arith.constant 0 : index
    %67 = vector.load %arg8[%c0_50, %c0_51] : memref<64x64xf32, #tpu.memory_space<vmem>>, vector<64x64xf32>
    tpu.vector_store %arg8[%c0_50, %c0_51], %66 {strides = array<i32>} : memref<64x64xf32, #tpu.memory_space<vmem>>, vector<64x64xf32>,
    %c0_52 = arith.constant 0 : index
    %c0_53 = arith.constant 0 : index
    %68 = vector.load %arg8[%c0_52, %c0_53] : memref<64x64xf32, #tpu.memory_space<vmem>>, vector<64x64xf32>
    %c0_54 = arith.constant 0 : index
    %c0_55 = arith.constant 0 : index
    %69 = vector.load %arg5[%c0_54, %c0_55] : memref<1x64xf32, #tpu.memory_space<vmem>>, vector<1x64xf32>
    %70 = vector.broadcast %69 : vector<1x64xf32> to vector<64x64xf32>
    %71 = arith.mulf %68, %70 : vector<64x64xf32>
    %c0_56 = arith.constant 0 : index
    %c0_57 = arith.constant 0 : index
    %72 = vector.load %arg6[%c0_56, %c0_57] : memref<1x64xf32, #tpu.memory_space<vmem>>, vector<1x64xf32>
    %73 = vector.broadcast %72 : vector<1x64xf32> to vector<64x64xf32>
    %74 = arith.addf %71, %73 : vector<64x64xf32>
    %cst_58 = arith.constant 0.000000e+00 : f32
    %75 = vector.broadcast %cst_58 : f32 to vector<64x64xf32>
    %76 = arith.maximumf %74, %75 : vector<64x64xf32>
    %77 = arith.truncf %76 : vector<64x64xf32> to vector<64x64xbf16>
    %c0_59 = arith.constant 0 : index
    %c0_60 = arith.constant 0 : index
    %c0_61 = arith.constant 0 : index
    %78 = vector.load %arg7[%c0_59, %c0_60, %c0_61] : memref<1x64x64xbf16, #tpu.memory_space<vmem>>, vector<1x64x64xbf16>
    %79 = vector.shape_cast %78 : vector<1x64x64xbf16> to vector<64x64xbf16>
    %80 = vector.shape_cast %77 : vector<64x64xbf16> to vector<1x64x64xbf16>
    tpu.vector_store %arg7[%c0_59, %c0_60, %c0_61], %80 {strides = array<i32>} : memref<1x64x64xbf16, #tpu.memory_space<vmem>>, vector<1x64x64xbf16>,
    return
  }
  func.func @transform_0(%arg0: i32, %arg1: i32) -> (i32, i32, i32) {
    %c0_i32 = arith.constant 0 : i32
    %c0_i32_0 = arith.constant 0 : i32
    %c0_i32_1 = arith.constant 0 : i32
    return %arg0, %c0_i32, %c0_i32_0 : i32, i32, i32
  }
  func.func @transform_1(%arg0: i32, %arg1: i32) -> (i32, i32, i32) {
    %c0_i32 = arith.constant 0 : i32
    %c0_i32_0 = arith.constant 0 : i32
    %c0_i32_1 = arith.constant 0 : i32
    return %arg0, %c0_i32, %c0_i32_0 : i32, i32, i32
  }
  func.func @transform_2(%arg0: i32, %arg1: i32) -> (i32, i32) {
    %c0_i32 = arith.constant 0 : i32
    %c0_i32_0 = arith.constant 0 : i32
    return %c0_i32, %arg1 : i32, i32
  }
  func.func @transform_3(%arg0: i32, %arg1: i32) -> (i32, i32) {
    %c0_i32 = arith.constant 0 : i32
    %c0_i32_0 = arith.constant 0 : i32
    return %c0_i32, %arg1 : i32, i32
  }
  func.func @transform_4(%arg0: i32, %arg1: i32) -> (i32, i32) {
    %c0_i32 = arith.constant 0 : i32
    %c0_i32_0 = arith.constant 0 : i32
    return %c0_i32, %arg1 : i32, i32
  }
  func.func @transform_5(%arg0: i32, %arg1: i32) -> (i32, i32, i32) {
    %c0_i32 = arith.constant 0 : i32
    %c0_i32_0 = arith.constant 0 : i32
    return %arg0, %c0_i32, %arg1 : i32, i32, i32
  }
}

module attributes {stable_mosaic.version = 11 : i64} {
  func.func @_matmul_epilogue_kernel(%arg0: i32, %arg1: i32, %arg2: memref<128x64xbf16, #tpu.memory_space<vmem>>, %arg3: memref<64x128xbf16, #tpu.memory_space<vmem>>, %arg4: memref<1x128xf32, #tpu.memory_space<vmem>>, %arg5: memref<1x128xf32, #tpu.memory_space<vmem>>, %arg6: memref<128x128xbf16, #tpu.memory_space<vmem>>) attributes {dimension_semantics = [#tpu.dimension_semantics<parallel>, #tpu.dimension_semantics<parallel>], iteration_bounds = array<i64: 1, 2>, scalar_prefetch = 0 : i64, scratch_operands = 0 : i64, tpu.core_type = #tpu.core_type<tc>, window_params = [{transform_indices = @transform_0, window_bounds = array<i64: 128, 64>}, {transform_indices = @transform_1, window_bounds = array<i64: 64, 128>}, {transform_indices = @transform_2, window_bounds = array<i64: 1, 128>}, {transform_indices = @transform_3, window_bounds = array<i64: 1, 128>}, {transform_indices = @transform_4, window_bounds = array<i64: 128, 128>}]} {
    %c0 = arith.constant 0 : index
    %c0_0 = arith.constant 0 : index
    %0 = vector.load %arg2[%c0, %c0_0] : memref<128x64xbf16, #tpu.memory_space<vmem>>, vector<128x64xbf16>
    %c0_1 = arith.constant 0 : index
    %c0_2 = arith.constant 0 : index
    %1 = vector.load %arg3[%c0_1, %c0_2] : memref<64x128xbf16, #tpu.memory_space<vmem>>, vector<64x128xbf16>
    %cst = arith.constant dense<0.000000e+00> : vector<128x128xf32>
    %2 = tpu.matmul %0, %1, %cst {dimension_numbers = #tpu.dot_dimension_numbers<[1], [0], [0], [1], [0, 0, 1, 1], [], []>} : vector<128x64xbf16>, vector<64x128xbf16>, vector<128x128xf32> -> vector<128x128xf32>
    %c0_3 = arith.constant 0 : index
    %c0_4 = arith.constant 0 : index
    %3 = vector.load %arg4[%c0_3, %c0_4] : memref<1x128xf32, #tpu.memory_space<vmem>>, vector<1x128xf32>
    %4 = vector.broadcast %3 : vector<1x128xf32> to vector<128x128xf32>
    %5 = arith.mulf %2, %4 : vector<128x128xf32>
    %c0_5 = arith.constant 0 : index
    %c0_6 = arith.constant 0 : index
    %6 = vector.load %arg5[%c0_5, %c0_6] : memref<1x128xf32, #tpu.memory_space<vmem>>, vector<1x128xf32>
    %7 = vector.broadcast %6 : vector<1x128xf32> to vector<128x128xf32>
    %8 = arith.addf %5, %7 : vector<128x128xf32>
    %9 = arith.truncf %8 : vector<128x128xf32> to vector<128x128xbf16>
    %c0_7 = arith.constant 0 : index
    %c0_8 = arith.constant 0 : index
    %10 = vector.load %arg6[%c0_7, %c0_8] : memref<128x128xbf16, #tpu.memory_space<vmem>>, vector<128x128xbf16>
    tpu.vector_store %arg6[%c0_7, %c0_8], %9 {strides = array<i32>} : memref<128x128xbf16, #tpu.memory_space<vmem>>, vector<128x128xbf16>,
    return
  }
  func.func @transform_0(%arg0: i32, %arg1: i32) -> (i32, i32) {
    %c0_i32 = arith.constant 0 : i32
    %c0_i32_0 = arith.constant 0 : i32
    return %arg0, %c0_i32 : i32, i32
  }
  func.func @transform_1(%arg0: i32, %arg1: i32) -> (i32, i32) {
    %c0_i32 = arith.constant 0 : i32
    %c0_i32_0 = arith.constant 0 : i32
    return %c0_i32, %arg1 : i32, i32
  }
  func.func @transform_2(%arg0: i32, %arg1: i32) -> (i32, i32) {
    %c0_i32 = arith.constant 0 : i32
    %c0_i32_0 = arith.constant 0 : i32
    return %c0_i32, %arg1 : i32, i32
  }
  func.func @transform_3(%arg0: i32, %arg1: i32) -> (i32, i32) {
    %c0_i32 = arith.constant 0 : i32
    %c0_i32_0 = arith.constant 0 : i32
    return %c0_i32, %arg1 : i32, i32
  }
  func.func @transform_4(%arg0: i32, %arg1: i32) -> (i32, i32) {
    %c0_i32 = arith.constant 0 : i32
    return %arg0, %arg1 : i32, i32
  }
}

module attributes {stable_mosaic.version = 11 : i64} {
  func.func @_matmul_epilogue_kernel(%arg0: i32, %arg1: i32, %arg2: memref<128x64xbf16, #tpu.memory_space<vmem>>, %arg3: memref<64x128xbf16, #tpu.memory_space<vmem>>, %arg4: memref<1x128xf32, #tpu.memory_space<vmem>>, %arg5: memref<1x128xf32, #tpu.memory_space<vmem>>, %arg6: memref<128x128xbf16, #tpu.memory_space<vmem>>, %arg7: memref<128x128xf32, #tpu.memory_space<vmem>>) attributes {dimension_semantics = [#tpu.dimension_semantics<parallel>, #tpu.dimension_semantics<parallel>], iteration_bounds = array<i64: 1, 2>, scalar_prefetch = 0 : i64, scratch_operands = 0 : i64, tpu.core_type = #tpu.core_type<tc>, window_params = [{transform_indices = @transform_0, window_bounds = array<i64: 128, 64>}, {transform_indices = @transform_1, window_bounds = array<i64: 64, 128>}, {transform_indices = @transform_2, window_bounds = array<i64: 1, 128>}, {transform_indices = @transform_3, window_bounds = array<i64: 1, 128>}, {transform_indices = @transform_4, window_bounds = array<i64: 128, 128>}, {transform_indices = @transform_5, window_bounds = array<i64: 128, 128>}]} {
    %c0 = arith.constant 0 : index
    %c0_0 = arith.constant 0 : index
    %0 = vector.load %arg2[%c0, %c0_0] : memref<128x64xbf16, #tpu.memory_space<vmem>>, vector<128x64xbf16>
    %c0_1 = arith.constant 0 : index
    %c0_2 = arith.constant 0 : index
    %1 = vector.load %arg3[%c0_1, %c0_2] : memref<64x128xbf16, #tpu.memory_space<vmem>>, vector<64x128xbf16>
    %cst = arith.constant dense<0.000000e+00> : vector<128x128xf32>
    %2 = tpu.matmul %0, %1, %cst {dimension_numbers = #tpu.dot_dimension_numbers<[1], [0], [0], [1], [0, 0, 1, 1], [], []>} : vector<128x64xbf16>, vector<64x128xbf16>, vector<128x128xf32> -> vector<128x128xf32>
    %c0_3 = arith.constant 0 : index
    %c0_4 = arith.constant 0 : index
    %3 = vector.load %arg4[%c0_3, %c0_4] : memref<1x128xf32, #tpu.memory_space<vmem>>, vector<1x128xf32>
    %4 = vector.broadcast %3 : vector<1x128xf32> to vector<128x128xf32>
    %5 = arith.mulf %2, %4 : vector<128x128xf32>
    %c0_5 = arith.constant 0 : index
    %c0_6 = arith.constant 0 : index
    %6 = vector.load %arg5[%c0_5, %c0_6] : memref<1x128xf32, #tpu.memory_space<vmem>>, vector<1x128xf32>
    %7 = vector.broadcast %6 : vector<1x128xf32> to vector<128x128xf32>
    %8 = arith.addf %5, %7 : vector<128x128xf32>
    %c0_7 = arith.constant 0 : index
    %c0_8 = arith.constant 0 : index
    %9 = vector.load %arg6[%c0_7, %c0_8] : memref<128x128xbf16, #tpu.memory_space<vmem>>, vector<128x128xbf16>
    %10 = arith.extf %9 : vector<128x128xbf16> to vector<128x128xf32>
    %11 = arith.addf %8, %10 : vector<128x128xf32>
    %cst_9 = arith.constant 0.000000e+00 : f32
    %12 = vector.broadcast %cst_9 : f32 to vector<128x128xf32>
    %13 = arith.maximumf %11, %12 : vector<128x128xf32>
    %c0_10 = arith.constant 0 : index
    %c0_11 = arith.constant 0 : index
    %14 = vector.load %arg7[%c0_10, %c0_11] : memref<128x128xf32, #tpu.memory_space<vmem>>, vector<128x128xf32>
    tpu.vector_store %arg7[%c0_10, %c0_11], %13 {strides = array<i32>} : memref<128x128xf32, #tpu.memory_space<vmem>>, vector<128x128xf32>,
    return
  }
  func.func @transform_0(%arg0: i32, %arg1: i32) -> (i32, i32) {
    %c0_i32 = arith.constant 0 : i32
    %c0_i32_0 = arith.constant 0 : i32
    return %arg0, %c0_i32 : i32, i32
  }
  func.func @transform_1(%arg0: i32, %arg1: i32) -> (i32, i32) {
    %c0_i32 = arith.constant 0 : i32
    %c0_i32_0 = arith.constant 0 : i32
    return %c0_i32, %arg1 : i32, i32
  }
  func.func @transform_2(%arg0: i32, %arg1: i32) -> (i32, i32) {
    %c0_i32 = arith.constant 0 : i32
    %c0_i32_0 = arith.constant 0 : i32
    return %c0_i32, %arg1 : i32, i32
  }
  func.func @transform_3(%arg0: i32, %arg1: i32) -> (i32, i32) {
    %c0_i32 = arith.constant 0 : i32
    %c0_i32_0 = arith.constant 0 : i32
    return %c0_i32, %arg1 : i32, i32
  }
  func.func @transform_4(%arg0: i32, %arg1: i32) -> (i32, i32) {
    %c0_i32 = arith.constant 0 : i32
    return %arg0, %arg1 : i32, i32
  }
  func.func @transform_5(%arg0: i32, %arg1: i32) -> (i32, i32) {
    %c0_i32 = arith.constant 0 : i32
    return %arg0, %arg1 : i32, i32
  }
}

</mosaic_0001>

<bundles_post_ra>
// kernel: quant_bottleneck_forward.4
= control target key start
LH: loop header
LB: loop body
LE: loop exit
PB: predicated region body
PF: predicated region fallthrough
CT: control target
= control target key end

     0   :  { %s1049_s15 = smov 0   ;;  %s1051_s16 = smov 0   ;;  %s1275_s0 = inlined_call_operand.vmem [shape: bf16[512,64], index: 0, kind: input, shape index: {}]   ;;  %s1276_s1 = inlined_call_operand.vmem [shape: bf16[64,64], index: 1, kind: input, shape index: {}]   ;;  %s1277_s2 = inlined_call_operand.vmem [shape: f32[1,64], index: 2, kind: input, shape index: {}]   ;;  %s1278_s3 = inlined_call_operand.vmem [shape: f32[1,64], index: 3, kind: input, shape index: {}]   ;;  %s1279_s4 = inlined_call_operand.vmem [shape: bf16[512,64], index: 4, kind: output, shape index: {}]  }
   0x1   :  { %s1053_s17 = smov 0  }
   0x2 LB: > { %s26_s18 = sadd.s32 1, %s1018_s16  ;;  %p839_p0 = scmp.ge.s32.totalorder %s1022_s17, 1  ;;  %s1022_s17 = sphi %s1053_s17, %s14_s17   ;;  %s1018_s16 = sphi %s1051_s16, %s1281_s16   ;;  %s1014_s15 = sphi %s1049_s15, %s1280_s15  }
   0x3   : > { %p28_p1 = scmp.ge.s32.totalorder %s26_s18, 2  ;;  %p202_p2 = scmp.lt.s32.totalorder %s1022_s17, 3 }
   0x5   : > { %s1283_s18 = smov (%p28_p1, %s26_s18), 0  ;;  %p203_p3 = pnand %p839_p0, %p202_p2 }
   0x6   : > { %s840_s21 = sshll.u32 (!%p203_p3), %s1014_s15, 5 }
   0x7   : > { %206 = sbr.rel (%p203_p3) target bundleno = 227 (0xe3), region = 36  ;;  %p242_p4 = scmp.lt.s32.totalorder (!%p203_p3), %s840_s21, 63 }
   0xc   : > { %v961_v0 = vld [vmem:[%s1276_s1 + $0x18] sm:$0xff]  ;;  %v960_v1 = vld [vmem:[%s1276_s1 + $0x10] sm:$0xff]  ;;  %s1285_s21 = smov (!%p242_p4, %s840_s21), 63  ;;  %v959_v2 = vld [vmem:[%s1276_s1 + $0x8] sm:$0xff]  ;;  %vm411_vm0 = vcmask 523264   ;;  %vm685_vm1 = vcmask 519168  }
   0xd   : > { %464 = vmatpush.bf16.msra.mxu0 %v961_v0  ;;  %962 = vmatpush.bf16.msra.mxu1 %v961_v0  ;;  %s841_s26 = sshll.u32 %s1285_s21, 2  ;;  %v958_v3 = vld [vmem:[%s1276_s1] sm:$0xff] }
   0xe   : > { %963 = vmatpush.bf16.msra.mxu2 %v961_v0  ;;  %964 = vmatpush.bf16.msra.mxu3 %v961_v0  ;;  %s1087_s5 = scalar_lea.vmem %s1275_s0, %s841_s26  ;;  %v1124_v20 = vld [vmem:[%s1277_s2] ss:$0 sm:$0xff]  ;;  %s1140_s12 = scalar_lea.vmem %s1279_s4, %s841_s26 }
   0xf   : > { %v942_v4 = vld [vmem:[%s1087_s5] sm:$0xff]  ;;  %v943_v8 = vld [vmem:[%s1087_s5 + $0x8] sm:$0xff]  ;;  %v944_v12 = vld [vmem:[%s1087_s5 + $0x10] sm:$0xff] }
  0x10   : > { %v946_v5 = vld [vmem:[%s1087_s5 + $0x20] sm:$0xff]  ;;  %v947_v9 = vld [vmem:[%s1087_s5 + $0x28] sm:$0xff]  ;;  %v948_v13 = vld [vmem:[%s1087_s5 + $0x30] sm:$0xff] }
  0x11   : > { %465 = vmatpush.bf16.msra.mxu0 %v960_v1  ;;  %965 = vmatpush.bf16.msra.mxu1 %v960_v1  ;;  %v950_v6 = vld [vmem:[%s1087_s5 + $0x40] sm:$0xff]  ;;  %v951_v10 = vld [vmem:[%s1087_s5 + $0x48] sm:$0xff]  ;;  %v952_v14 = vld [vmem:[%s1087_s5 + $0x50] sm:$0xff] }
  0x12   : > { %966 = vmatpush.bf16.msra.mxu2 %v960_v1  ;;  %967 = vmatpush.bf16.msra.mxu3 %v960_v1  ;;  %v954_v7 = vld [vmem:[%s1087_s5 + $0x60] sm:$0xff]  ;;  %v955_v11 = vld [vmem:[%s1087_s5 + $0x68] sm:$0xff]  ;;  %v956_v15 = vld [vmem:[%s1087_s5 + $0x70] sm:$0xff] }
  0x13   : > { %v945_v16 = vld [vmem:[%s1087_s5 + $0x18] sm:$0xff]  ;;  %v1129_v21 = vld [vmem:[%s1278_s3] ss:$0 sm:$0xff] }
  0x14   : > { %v949_v17 = vld [vmem:[%s1087_s5 + $0x38] sm:$0xff] }
  0x15   : > { %466 = vmatpush.bf16.msra.mxu0 %v959_v2  ;;  %968 = vmatpush.bf16.msra.mxu1 %v959_v2  ;;  %v953_v18 = vld [vmem:[%s1087_s5 + $0x58] sm:$0xff] }
  0x16   : > { %969 = vmatpush.bf16.msra.mxu2 %v959_v2  ;;  %970 = vmatpush.bf16.msra.mxu3 %v959_v2  ;;  %v957_v19 = vld [vmem:[%s1087_s5 + $0x78] sm:$0xff] }
  0x19   : > { %467 = vmatpush.bf16.msra.mxu0 %v958_v3  ;;  %971 = vmatpush.bf16.msra.mxu1 %v958_v3 }
  0x1a   : > { %972 = vmatpush.bf16.msra.mxu2 %v958_v3  ;;  %973 = vmatpush.bf16.msra.mxu3 %v958_v3 }
  0x1c   : > { %924 = vmatmul.msk.bf16.vlgmr.msra.gmra.mxu0 %vm411_vm0, %v942_v4  ;;  %928 = vmatmul.msk.bf16.vlgmr.msra.gmra.mxu1 %vm411_vm0, %v946_v5 }
  0x1d   : > { %932 = vmatmul.msk.bf16.vlgmr.msra.gmra.mxu2 %vm411_vm0, %v950_v6  ;;  %936 = vmatmul.msk.bf16.vlgmr.msra.gmra.mxu3 %vm411_vm0, %v954_v7 }
  0x2c   : > { %925 = vmatmul.msk.bf16.gmra.mxu0 %vm411_vm0, %v943_v8  ;;  %929 = vmatmul.msk.bf16.gmra.mxu1 %vm411_vm0, %v947_v9 }
  0x2d   : > { %933 = vmatmul.msk.bf16.gmra.mxu2 %vm411_vm0, %v951_v10  ;;  %937 = vmatmul.msk.bf16.gmra.mxu3 %vm411_vm0, %v955_v11 }
  0x3c   : > { %926 = vmatmul.msk.bf16.gmra.mxu0 %vm411_vm0, %v944_v12  ;;  %930 = vmatmul.msk.bf16.gmra.mxu1 %vm411_vm0, %v948_v13 }
  0x3d   : > { %934 = vmatmul.msk.bf16.gmra.mxu2 %vm411_vm0, %v952_v14  ;;  %938 = vmatmul.msk.bf16.gmra.mxu3 %vm411_vm0, %v956_v15 }
  0x4c   : > { %927 = vmatmul.msk.bf16.gmra.mxu0 %vm411_vm0, %v945_v16  ;;  %931 = vmatmul.msk.bf16.gmra.mxu1 %vm411_vm0, %v949_v17 }
  0x4d   : > { %935 = vmatmul.msk.bf16.gmra.mxu2 %vm411_vm0, %v953_v18  ;;  %939 = vmatmul.msk.bf16.gmra.mxu3 %vm411_vm0, %v957_v19 }
  0x99   : > { %v469_v22 = vpop.f32.mrf.mxu0  ;;  %v489_v23 = vpop.f32.mrf.mxu1 }
  0x9a   : > { %v553_v24 = vmul.f32 %v1124_v20, %v469_v22  ;;  %v561_v25 = vmul.f32 %v1124_v20, %v489_v23 }
  0x9c   : > { %v589_v26 = vadd.f32 %v1129_v21, %v553_v24  ;;  %v597_v27 = vadd.f32 %v1129_v21, %v561_v25 }
  0x9e   : > { %v621_v28 = vmax.f32 %v589_v26, 0.0  ;;  %v629_v29 = vmax.f32 %v597_v27, 0.0 }
  0xa0   : > { %v653_v30 = vpack.c.bf16 %v621_v28, %v621_v28  ;;  %v661_v31 = vpack.c.bf16 %v629_v29, %v629_v29  ;;  %v509_v32 = vpop.f32.mrf.mxu2  ;;  %v529_v33 = vpop.f32.mrf.mxu3 }
  0xa1   : > { %v569_v34 = vmul.f32 %v1124_v20, %v509_v32  ;;  %v577_v35 = vmul.f32 %v1124_v20, %v529_v33  ;;  %v471_v36 = vpop.f32.mrf.mxu0  ;;  %v491_v37 = vpop.f32.mrf.mxu1 }
  0xa2   : > { %686 = vst.msk [vmem:[%s1140_s12] sm:$0xf] %vm685_vm1, %v653_v30  ;;  %v554_v38 = vmul.f32 %v1124_v20, %v471_v36  ;;  %v562_v39 = vmul.f32 %v1124_v20, %v491_v37 }
  0xa3   : > { %694 = vst.msk [vmem:[%s1140_s12 + $0x20] sm:$0xf] %vm685_vm1, %v661_v31  ;;  %v605_v40 = vadd.f32 %v1129_v21, %v569_v34  ;;  %v613_v41 = vadd.f32 %v1129_v21, %v577_v35 }
  0xa4   : > { %v590_v42 = vadd.f32 %v1129_v21, %v554_v38  ;;  %v598_v43 = vadd.f32 %v1129_v21, %v562_v39 }
  0xa5   : > { %v637_v44 = vmax.f32 %v605_v40, 0.0  ;;  %v645_v45 = vmax.f32 %v613_v41, 0.0 }
  0xa6   : > { %v622_v46 = vmax.f32 %v590_v42, 0.0  ;;  %v630_v47 = vmax.f32 %v598_v43, 0.0 }
  0xa7   : > { %v669_v48 = vpack.c.bf16 %v637_v44, %v637_v44  ;;  %v677_v49 = vpack.c.bf16 %v645_v45, %v645_v45 }
  0xa8   : > { %v654_v50 = vpack.c.bf16 %v622_v46, %v622_v46  ;;  %v662_v51 = vpack.c.bf16 %v630_v47, %v630_v47  ;;  %v511_v52 = vpop.f32.mrf.mxu2  ;;  %v531_v53 = vpop.f32.mrf.mxu3 }
  0xa9   : > { %702 = vst.msk [vmem:[%s1140_s12 + $0x40] sm:$0xf] %vm685_vm1, %v669_v48  ;;  %v570_v54 = vmul.f32 %v1124_v20, %v511_v52  ;;  %v578_v55 = vmul.f32 %v1124_v20, %v531_v53  ;;  %v474_v56 = vpop.f32.mrf.mxu0  ;;  %v494_v57 = vpop.f32.mrf.mxu1 }
  0xaa   : > { %710 = vst.msk [vmem:[%s1140_s12 + $0x60] sm:$0xf] %vm685_vm1, %v677_v49  ;;  %v555_v58 = vmul.f32 %v1124_v20, %v474_v56  ;;  %v563_v59 = vmul.f32 %v1124_v20, %v494_v57 }
  0xab   : > { %687 = vst.msk [vmem:[%s1140_s12 + $0x4] sm:$0xf] %vm685_vm1, %v654_v50  ;;  %v606_v60 = vadd.f32 %v1129_v21, %v570_v54  ;;  %v614_v61 = vadd.f32 %v1129_v21, %v578_v55 }
  0xac   : > { %695 = vst.msk [vmem:[%s1140_s12 + $0x24] sm:$0xf] %vm685_vm1, %v662_v51  ;;  %v591_v62 = vadd.f32 %v1129_v21, %v555_v58  ;;  %v599_v63 = vadd.f32 %v1129_v21, %v563_v59 }
  0xad   : > { %v638_v0 = vmax.f32 %v606_v60, 0.0  ;;  %v646_v1 = vmax.f32 %v614_v61, 0.0 }
  0xae   : > { %v623_v2 = vmax.f32 %v591_v62, 0.0  ;;  %v631_v3 = vmax.f32 %v599_v63, 0.0 }
  0xaf   : > { %v670_v4 = vpack.c.bf16 %v638_v0, %v638_v0  ;;  %v678_v5 = vpack.c.bf16 %v646_v1, %v646_v1 }
  0xb0   : > { %v655_v6 = vpack.c.bf16 %v623_v2, %v623_v2  ;;  %v663_v7 = vpack.c.bf16 %v631_v3, %v631_v3  ;;  %v514_v8 = vpop.f32.mrf.mxu2  ;;  %v534_v9 = vpop.f32.mrf.mxu3 }
  0xb1   : > { %703 = vst.msk [vmem:[%s1140_s12 + $0x44] sm:$0xf] %vm685_vm1, %v670_v4  ;;  %v571_v10 = vmul.f32 %v1124_v20, %v514_v8  ;;  %v579_v11 = vmul.f32 %v1124_v20, %v534_v9  ;;  %v476_v12 = vpop.f32.mrf.mxu0  ;;  %v496_v13 = vpop.f32.mrf.mxu1 }
  0xb2   : > { %711 = vst.msk [vmem:[%s1140_s12 + $0x64] sm:$0xf] %vm685_vm1, %v678_v5  ;;  %v556_v14 = vmul.f32 %v1124_v20, %v476_v12  ;;  %v564_v15 = vmul.f32 %v1124_v20, %v496_v13 }
  0xb3   : > { %688 = vst.msk [vmem:[%s1140_s12 + $0x8] sm:$0xf] %vm685_vm1, %v655_v6  ;;  %v607_v16 = vadd.f32 %v1129_v21, %v571_v10  ;;  %v615_v17 = vadd.f32 %v1129_v21, %v579_v11 }
  0xb4   : > { %696 = vst.msk [vmem:[%s1140_s12 + $0x28] sm:$0xf] %vm685_vm1, %v663_v7  ;;  %v592_v18 = vadd.f32 %v1129_v21, %v556_v14  ;;  %v600_v19 = vadd.f32 %v1129_v21, %v564_v15 }
  0xb5   : > { %v639_v22 = vmax.f32 %v607_v16, 0.0  ;;  %v647_v23 = vmax.f32 %v615_v17, 0.0 }
  0xb6   : > { %v624_v24 = vmax.f32 %v592_v18, 0.0  ;;  %v632_v25 = vmax.f32 %v600_v19, 0.0 }
  0xb7   : > { %v671_v26 = vpack.c.bf16 %v639_v22, %v639_v22  ;;  %v679_v27 = vpack.c.bf16 %v647_v23, %v647_v23 }
  0xb8   : > { %v656_v28 = vpack.c.bf16 %v624_v24, %v624_v24  ;;  %v664_v29 = vpack.c.bf16 %v632_v25, %v632_v25  ;;  %v516_v30 = vpop.f32.mrf.mxu2  ;;  %v536_v31 = vpop.f32.mrf.mxu3 }
  0xb9   : > { %704 = vst.msk [vmem:[%s1140_s12 + $0x48] sm:$0xf] %vm685_vm1, %v671_v26  ;;  %v572_v32 = vmul.f32 %v1124_v20, %v516_v30  ;;  %v580_v33 = vmul.f32 %v1124_v20, %v536_v31  ;;  %v479_v34 = vpop.f32.mrf.mxu0  ;;  %v499_v35 = vpop.f32.mrf.mxu1 }
  0xba   : > { %712 = vst.msk [vmem:[%s1140_s12 + $0x68] sm:$0xf] %vm685_vm1, %v679_v27  ;;  %v557_v36 = vmul.f32 %v1124_v20, %v479_v34  ;;  %v565_v37 = vmul.f32 %v1124_v20, %v499_v35 }
  0xbb   : > { %689 = vst.msk [vmem:[%s1140_s12 + $0xc] sm:$0xf] %vm685_vm1, %v656_v28  ;;  %v608_v38 = vadd.f32 %v1129_v21, %v572_v32  ;;  %v616_v39 = vadd.f32 %v1129_v21, %v580_v33 }
  0xbc   : > { %697 = vst.msk [vmem:[%s1140_s12 + $0x2c] sm:$0xf] %vm685_vm1, %v664_v29  ;;  %v593_v40 = vadd.f32 %v1129_v21, %v557_v36  ;;  %v601_v41 = vadd.f32 %v1129_v21, %v565_v37 }
  0xbd   : > { %v640_v42 = vmax.f32 %v608_v38, 0.0  ;;  %v648_v43 = vmax.f32 %v616_v39, 0.0 }
  0xbe   : > { %v625_v44 = vmax.f32 %v593_v40, 0.0  ;;  %v633_v45 = vmax.f32 %v601_v41, 0.0 }
  0xbf   : > { %v672_v46 = vpack.c.bf16 %v640_v42, %v640_v42  ;;  %v680_v47 = vpack.c.bf16 %v648_v43, %v648_v43 }
  0xc0   : > { %v657_v48 = vpack.c.bf16 %v625_v44, %v625_v44  ;;  %v665_v49 = vpack.c.bf16 %v633_v45, %v633_v45  ;;  %v519_v50 = vpop.f32.mrf.mxu2  ;;  %v539_v51 = vpop.f32.mrf.mxu3 }
  0xc1   : > { %705 = vst.msk [vmem:[%s1140_s12 + $0x4c] sm:$0xf] %vm685_vm1, %v672_v46  ;;  %v573_v52 = vmul.f32 %v1124_v20, %v519_v50  ;;  %v581_v53 = vmul.f32 %v1124_v20, %v539_v51  ;;  %v481_v54 = vpop.f32.mrf.mxu0  ;;  %v501_v55 = vpop.f32.mrf.mxu1 }
  0xc2   : > { %713 = vst.msk [vmem:[%s1140_s12 + $0x6c] sm:$0xf] %vm685_vm1, %v680_v47  ;;  %v558_v56 = vmul.f32 %v1124_v20, %v481_v54  ;;  %v566_v57 = vmul.f32 %v1124_v20, %v501_v55 }
  0xc3   : > { %690 = vst.msk [vmem:[%s1140_s12 + $0x10] sm:$0xf] %vm685_vm1, %v657_v48  ;;  %v609_v58 = vadd.f32 %v1129_v21, %v573_v52  ;;  %v617_v59 = vadd.f32 %v1129_v21, %v581_v53 }
  0xc4   : > { %698 = vst.msk [vmem:[%s1140_s12 + $0x30] sm:$0xf] %vm685_vm1, %v665_v49  ;;  %v594_v60 = vadd.f32 %v1129_v21, %v558_v56  ;;  %v602_v61 = vadd.f32 %v1129_v21, %v566_v57 }
  0xc5   : > { %v641_v62 = vmax.f32 %v609_v58, 0.0  ;;  %v649_v63 = vmax.f32 %v617_v59, 0.0 }
  0xc6   : > { %v626_v0 = vmax.f32 %v594_v60, 0.0  ;;  %v634_v1 = vmax.f32 %v602_v61, 0.0 }
  0xc7   : > { %v673_v2 = vpack.c.bf16 %v641_v62, %v641_v62  ;;  %v681_v3 = vpack.c.bf16 %v649_v63, %v649_v63 }
  0xc8   : > { %v658_v4 = vpack.c.bf16 %v626_v0, %v626_v0  ;;  %v666_v5 = vpack.c.bf16 %v634_v1, %v634_v1  ;;  %v521_v6 = vpop.f32.mrf.mxu2  ;;  %v541_v7 = vpop.f32.mrf.mxu3 }
  0xc9   : > { %706 = vst.msk [vmem:[%s1140_s12 + $0x50] sm:$0xf] %vm685_vm1, %v673_v2  ;;  %v574_v8 = vmul.f32 %v1124_v20, %v521_v6  ;;  %v582_v9 = vmul.f32 %v1124_v20, %v541_v7  ;;  %v484_v10 = vpop.f32.mrf.mxu0  ;;  %v504_v11 = vpop.f32.mrf.mxu1 }
  0xca   : > { %714 = vst.msk [vmem:[%s1140_s12 + $0x70] sm:$0xf] %vm685_vm1, %v681_v3  ;;  %v559_v12 = vmul.f32 %v1124_v20, %v484_v10  ;;  %v567_v13 = vmul.f32 %v1124_v20, %v504_v11 }
  0xcb   : > { %691 = vst.msk [vmem:[%s1140_s12 + $0x14] sm:$0xf] %vm685_vm1, %v658_v4  ;;  %v610_v14 = vadd.f32 %v1129_v21, %v574_v8  ;;  %v618_v15 = vadd.f32 %v1129_v21, %v582_v9 }
  0xcc   : > { %699 = vst.msk [vmem:[%s1140_s12 + $0x34] sm:$0xf] %vm685_vm1, %v666_v5  ;;  %v595_v16 = vadd.f32 %v1129_v21, %v559_v12  ;;  %v603_v17 = vadd.f32 %v1129_v21, %v567_v13 }
  0xcd   : > { %v642_v18 = vmax.f32 %v610_v14, 0.0  ;;  %v650_v19 = vmax.f32 %v618_v15, 0.0 }
  0xce   : > { %v627_v22 = vmax.f32 %v595_v16, 0.0  ;;  %v635_v23 = vmax.f32 %v603_v17, 0.0 }
  0xcf   : > { %v674_v24 = vpack.c.bf16 %v642_v18, %v642_v18  ;;  %v682_v25 = vpack.c.bf16 %v650_v19, %v650_v19 }
  0xd0   : > { %v659_v26 = vpack.c.bf16 %v627_v22, %v627_v22  ;;  %v667_v27 = vpack.c.bf16 %v635_v23, %v635_v23  ;;  %v524_v28 = vpop.f32.mrf.mxu2  ;;  %v544_v29 = vpop.f32.mrf.mxu3 }
  0xd1   : > { %707 = vst.msk [vmem:[%s1140_s12 + $0x54] sm:$0xf] %vm685_vm1, %v674_v24  ;;  %v575_v30 = vmul.f32 %v1124_v20, %v524_v28  ;;  %v583_v31 = vmul.f32 %v1124_v20, %v544_v29  ;;  %v486_v32 = vpop.f32.mrf.mxu0  ;;  %v506_v33 = vpop.f32.mrf.mxu1 }
  0xd2   : > { %715 = vst.msk [vmem:[%s1140_s12 + $0x74] sm:$0xf] %vm685_vm1, %v682_v25  ;;  %v560_v34 = vmul.f32 %v1124_v20, %v486_v32  ;;  %v568_v35 = vmul.f32 %v1124_v20, %v506_v33 }
  0xd3   : > { %692 = vst.msk [vmem:[%s1140_s12 + $0x18] sm:$0xf] %vm685_vm1, %v659_v26  ;;  %v611_v36 = vadd.f32 %v1129_v21, %v575_v30  ;;  %v619_v37 = vadd.f32 %v1129_v21, %v583_v31 }
  0xd4   : > { %700 = vst.msk [vmem:[%s1140_s12 + $0x38] sm:$0xf] %vm685_vm1, %v667_v27  ;;  %v596_v38 = vadd.f32 %v1129_v21, %v560_v34  ;;  %v604_v39 = vadd.f32 %v1129_v21, %v568_v35 }
  0xd5   : > { %v643_v40 = vmax.f32 %v611_v36, 0.0  ;;  %v651_v41 = vmax.f32 %v619_v37, 0.0 }
  0xd6   : > { %v628_v42 = vmax.f32 %v596_v38, 0.0  ;;  %v636_v43 = vmax.f32 %v604_v39, 0.0 }
  0xd7   : > { %v675_v44 = vpack.c.bf16 %v643_v40, %v643_v40  ;;  %v683_v45 = vpack.c.bf16 %v651_v41, %v651_v41 }
  0xd8   : > { %v660_v46 = vpack.c.bf16 %v628_v42, %v628_v42  ;;  %v668_v47 = vpack.c.bf16 %v636_v43, %v636_v43  ;;  %v526_v48 = vpop.f32.mrf.mxu2  ;;  %v546_v49 = vpop.f32.mrf.mxu3 }
  0xd9   : > { %708 = vst.msk [vmem:[%s1140_s12 + $0x58] sm:$0xf] %vm685_vm1, %v675_v44  ;;  %v576_v50 = vmul.f32 %v1124_v20, %v526_v48  ;;  %v584_v51 = vmul.f32 %v1124_v20, %v546_v49 }
  0xda   : > { %716 = vst.msk [vmem:[%s1140_s12 + $0x78] sm:$0xf] %vm685_vm1, %v683_v45 }
  0xdb   : > { %693 = vst.msk [vmem:[%s1140_s12 + $0x1c] sm:$0xf] %vm685_vm1, %v660_v46  ;;  %v612_v52 = vadd.f32 %v1129_v21, %v576_v50  ;;  %v620_v53 = vadd.f32 %v1129_v21, %v584_v51 }
  0xdc   : > { %701 = vst.msk [vmem:[%s1140_s12 + $0x3c] sm:$0xf] %vm685_vm1, %v668_v47 }
  0xdd   : > { %v644_v54 = vmax.f32 %v612_v52, 0.0  ;;  %v652_v55 = vmax.f32 %v620_v53, 0.0 }
  0xdf   : > { %v676_v56 = vpack.c.bf16 %v644_v54, %v644_v54  ;;  %v684_v57 = vpack.c.bf16 %v652_v55, %v652_v55 }
  0xe1   : > { %709 = vst.msk [vmem:[%s1140_s12 + $0x5c] sm:$0xf] %vm685_vm1, %v676_v56 }
  0xe2   : > { %717 = vst.msk [vmem:[%s1140_s12 + $0x7c] sm:$0xf] %vm685_vm1, %v684_v57 }
  0xe3 PF: > { %s14_s17 = sadd.s32 1, %s1022_s17   ;;  %s1280_s15 = smov %s1018_s16 }
  0xe4   : > { %p11_p5 = scmp.ge.s32.totalorder %s14_s17, 4   ;;  %s1281_s16 = smov %s1283_s18 }
  0xe6   :  { %13 = sbr.rel (!%p11_p5) target bundleno = 2 (0x2), region = 75 }

// kernel: quant_bottleneck_forward.6
= control target key start
LH: loop header
LB: loop body
LE: loop exit
PB: predicated region body
PF: predicated region fallthrough
CT: control target
= control target key end

     0   :  { %s1024_s15 = smov 0   ;;  %s1026_s16 = smov 0   ;;  %s1180_s0 = inlined_call_operand.vmem [shape: bf16[128,64], index: 0, kind: input, shape index: {}]   ;;  %s1181_s1 = inlined_call_operand.vmem [shape: bf16[64,256], index: 1, kind: input, shape index: {}]   ;;  %s1182_s2 = inlined_call_operand.vmem [shape: f32[1,256], index: 2, kind: input, shape index: {}]   ;;  %s1183_s3 = inlined_call_operand.vmem [shape: f32[1,256], index: 3, kind: input, shape index: {}]   ;;  %s1184_s4 = inlined_call_operand.vmem [shape: bf16[128,256], index: 4, kind: output, shape index: {}]  }
   0x1   :  { %s1028_s17 = smov 0   ;;  %s1030_s18 = smov 0  }
   0x2   :  { %s1032_s19 = smov 0  }
   0x3 LB: > { %s23_s20 = sadd.s32 1, %s993_s18  ;;  %s776_s21 = sadd.s32 4294967295, %s997_s19   ;;  %s997_s19 = sphi %s1032_s19, %s14_s19   ;;  %s993_s18 = sphi %s1030_s18, %s1189_s18   ;;  %s989_s17 = sphi %s1028_s17, %s1188_s17   ;;  %s985_s16 = sphi %s1026_s16, %s1187_s16   ;;  %s981_s15 = sphi %s1024_s15, %s1186_s15  }
   0x4   : > { %p24_p0 = scmp.ge.s32.totalorder %s23_s20, 2  ;;  %p66_p1 = scmp.ne.s32.totalorder %s985_s16, %s981_s15 }
   0x5   : > { %p67_p2 = scmp.eq.s32.totalorder %s997_s19, 0  ;;  %p150_p4 = scmp.eq.s32.totalorder %s776_s21, 1 }
   0x6   : > { %s1191_s20 = smov (%p24_p0, %s23_s20), 0  ;;  %s59_s23 = sadd.s32 1, %s985_s16 }
   0x7   : > { %p68_p3 = por %p67_p2, %p66_p1  ;;  %s56_s22 = ssub.s32 %s993_s18, %s1191_s20 }
   0x8   : > { %p57_p5 = scmp.eq.s32.totalorder %s56_s22, 0  ;;  %p1059_p6 = por %p150_p4, %p66_p1 }
   0x9   : > { %p780_p7 = scmp.ge.s32.totalorder %s997_s19, 2 }
   0xa   : > { %s1064_s25 = scalar_select %p57_p5, %s985_s16, %s59_s23  }
   0xb   : > { %181 = sbr.rel (%p780_p7) target bundleno = 28 (0x1c), region = 20 }
  0x10   : > { %184 = sbr.rel (!%p68_p3) target bundleno = 28 (0x1c), region = 24  ;;  %s186_s26 = sand.u32 (%p68_p3), 1, %s985_s16  }
  0x11   : > { %s782_s27 = sshll.u32 (%p68_p3), %s993_s18, 2  ;;  %s781_s28 = sshll.u32 (%p68_p3), %s186_s26, 5 }
  0x12   : > { %s190_s5 = scalar_lea.vmem (%p68_p3), %s1181_s1, %s782_s27  ;;  %s188_s6 = scalar_lea.vmem (%p68_p3), [#allocation2], %s781_s28 }
  0x13   : > { %v207_v0 = vld [vmem:[%s190_s5] sm:$0xf] (%p68_p3)  ;;  %v209_v1 = vld [vmem:[%s190_s5 + $0x8] sm:$0xf] (%p68_p3)  ;;  %v211_v2 = vld [vmem:[%s190_s5 + $0x10] sm:$0xf] (%p68_p3) }
  0x14   : > { %208 = vst [vmem:[%s188_s6] sm:$0xf] (%p68_p3), %v207_v0  ;;  %v213_v3 = vld [vmem:[%s190_s5 + $0x18] sm:$0xf] (%p68_p3)  ;;  %v215_v4 = vld [vmem:[%s190_s5 + $0x20] sm:$0xf] (%p68_p3) }
  0x15   : > { %210 = vst [vmem:[%s188_s6 + $0x4] sm:$0xf] %v209_v1  ;;  %v217_v5 = vld [vmem:[%s190_s5 + $0x28] sm:$0xf]  ;;  %v219_v6 = vld [vmem:[%s190_s5 + $0x30] sm:$0xf] }
  0x16   : > { %212 = vst [vmem:[%s188_s6 + $0x8] sm:$0xf] %v211_v2  ;;  %v221_v7 = vld [vmem:[%s190_s5 + $0x38] sm:$0xf] }
  0x17   : > { %214 = vst [vmem:[%s188_s6 + $0xc] sm:$0xf] %v213_v3 }
  0x18   : > { %216 = vst [vmem:[%s188_s6 + $0x10] sm:$0xf] %v215_v4 }
  0x19   : > { %218 = vst [vmem:[%s188_s6 + $0x14] sm:$0xf] %v217_v5 }
  0x1a   : > { %220 = vst [vmem:[%s188_s6 + $0x18] sm:$0xf] %v219_v6 }
  0x1b   : > { %222 = vst [vmem:[%s188_s6 + $0x1c] sm:$0xf] %v221_v7 }
  0x1c PF: > { %p783_p8 = scmp.ge.s32.totalorder %s997_s19, 1  ;;  %p273_p9 = scmp.lt.s32.totalorder %s997_s19, 3 }
  0x1e   : > { %p274_p10 = pnand %p783_p8, %p273_p9 }
  0x1f   : > { %s280_s7 = sand.u32 (!%p274_p10), 1, %s981_s15   ;;  %p321_p11 = scmp.lt.s32.totalorder (!%p274_p10), %s989_s17, 1 }
  0x20   : > { %277 = sbr.rel (%p274_p10) target bundleno = 228 (0xe4), region = 73  ;;  %s784_s8 = sshll.u32 (!%p274_p10), %s280_s7, 5 }
  0x21   : > { %s282_s9 = scalar_lea.vmem (!%p274_p10), [#allocation2], %s784_s8  ;;  %s785_s5 = sshll.u32 (!%p274_p10), %s280_s7, 6 }
  0x25   : > { %v857_v8 = vld [vmem:[%s282_s9 + $0x18] sm:$0xff]  ;;  %s1079_s10 = scalar_select %p321_p11, %s989_s17, 1  ;;  %v856_v9 = vld [vmem:[%s282_s9 + $0x10] sm:$0xff]  ;;  %v855_v10 = vld [vmem:[%s282_s9 + $0x8] sm:$0xff]  ;;  %vm417_vm0 = vcmask 523264  }
  0x26   : > { %446 = vmatpush.bf16.msra.mxu0 %v857_v8  ;;  %905 = vmatpush.bf16.msra.mxu1 %v857_v8  ;;  %v854_v11 = vld [vmem:[%s282_s9] sm:$0xff]  ;;  %v848_v13 = vld [vmem:[%s1180_s0 + $0x10] sm:$0xff]  ;;  %v847_v16 = vld [vmem:[%s1180_s0 + $0x8] sm:$0xff]  ;;  %s843_s15 = sshll.u32 (%p1059_p6), %s989_s17, 2 }
  0x27   : > { %s323_s13 = scalar_lea.vmem %s1182_s2, %s1079_s10  ;;  %s326_s22 = scalar_lea.vmem %s1183_s3, %s1079_s10  ;;  %906 = vmatpush.bf16.msra.mxu2 %v857_v8  ;;  %907 = vmatpush.bf16.msra.mxu3 %v857_v8  ;;  %v846_v12 = vld [vmem:[%s1180_s0] sm:$0xff]  ;;  %v852_v15 = vld [vmem:[%s1180_s0 + $0x30] sm:$0xff]  ;;  %v849_v17 = vld [vmem:[%s1180_s0 + $0x18] sm:$0xff] }
  0x28   : > { %v850_v14 = vld [vmem:[%s1180_s0 + $0x20] sm:$0xff]  ;;  %v851_v18 = vld [vmem:[%s1180_s0 + $0x28] sm:$0xff]  ;;  %v853_v19 = vld [vmem:[%s1180_s0 + $0x38] sm:$0xff] }
  0x29   : > { %v957_v22 = vld [vmem:[%s323_s13] ss:$0 sm:$0xff]  ;;  %s1133_s13 = scalar_lea.vmem [#allocation3], %s785_s5 }
  0x2a   : > { %447 = vmatpush.bf16.msra.mxu0 %v856_v9  ;;  %908 = vmatpush.bf16.msra.mxu1 %v856_v9  ;;  %v958_v24 = vld [vmem:[%s326_s22] ss:$0 sm:$0xff]  ;;  %s574_s22 = scalar_lea.vmem (%p1059_p6), %s1184_s4, %s843_s15 }
  0x2b   : > { %909 = vmatpush.bf16.msra.mxu2 %v856_v9  ;;  %910 = vmatpush.bf16.msra.mxu3 %v856_v9 }
  0x2e   : > { %448 = vmatpush.bf16.msra.mxu0 %v855_v10  ;;  %911 = vmatpush.bf16.msra.mxu1 %v855_v10 }
  0x2f   : > { %912 = vmatpush.bf16.msra.mxu2 %v855_v10  ;;  %913 = vmatpush.bf16.msra.mxu3 %v855_v10 }
  0x32   : > { %449 = vmatpush.bf16.msra.mxu0 %v854_v11  ;;  %914 = vmatpush.bf16.msra.mxu1 %v854_v11 }
  0x33   : > { %915 = vmatpush.bf16.msra.mxu2 %v854_v11  ;;  %916 = vmatpush.bf16.msra.mxu3 %v854_v11 }
  0x35   : > { %834 = vmatmul.msk.bf16.vlgmr.msra.gmra.mxu0 %vm417_vm0, %v846_v12  ;;  %836 = vmatmul.msk.bf16.vlgmr.msra.gmra.mxu1 %vm417_vm0, %v848_v13 }
  0x36   : > { %838 = vmatmul.msk.bf16.vlgmr.msra.gmra.mxu2 %vm417_vm0, %v850_v14  ;;  %840 = vmatmul.msk.bf16.vlgmr.msra.gmra.mxu3 %vm417_vm0, %v852_v15 }
  0x45   : > { %835 = vmatmul.msk.bf16.gmra.mxu0 %vm417_vm0, %v847_v16  ;;  %837 = vmatmul.msk.bf16.gmra.mxu1 %vm417_vm0, %v849_v17 }
  0x46   : > { %839 = vmatmul.msk.bf16.gmra.mxu2 %vm417_vm0, %v851_v18  ;;  %841 = vmatmul.msk.bf16.gmra.mxu3 %vm417_vm0, %v853_v19 }
  0xb2   : > { %v451_v20 = vpop.f32.mrf.mxu0  ;;  %v461_v21 = vpop.f32.mrf.mxu1 }
  0xb3   : > { %v495_v23 = vmul.f32 %v957_v22, %v451_v20  ;;  %v499_v25 = vmul.f32 %v957_v22, %v461_v21 }
  0xb5   : > { %v515_v32 = vadd.f32 %v958_v24, %v495_v23  ;;  %v519_v33 = vadd.f32 %v958_v24, %v499_v25 }
  0xb9   : > { %v471_v26 = vpop.f32.mrf.mxu2  ;;  %v481_v27 = vpop.f32.mrf.mxu3 }
  0xba   : > { %v453_v28 = vpop.f32.mrf.mxu0  ;;  %v463_v29 = vpop.f32.mrf.mxu1  ;;  %v503_v38 = vmul.f32 %v957_v22, %v471_v26  ;;  %v507_v39 = vmul.f32 %v957_v22, %v481_v27 }
  0xbb   : > { %v496_v30 = vmul.f32 %v957_v22, %v453_v28  ;;  %v500_v31 = vmul.f32 %v957_v22, %v463_v29 }
  0xbc   : > { %v523_v46 = vadd.f32 %v958_v24, %v503_v38  ;;  %v527_v47 = vadd.f32 %v958_v24, %v507_v39 }
  0xbd   : > { %v516_v34 = vadd.f32 %v958_v24, %v496_v30  ;;  %v520_v35 = vadd.f32 %v958_v24, %v500_v31 }
  0xbf   : > { %v861_v36 = vpack.c.bf16 %v516_v34, %v515_v32  ;;  %v871_v37 = vpack.c.bf16 %v520_v35, %v519_v33 }
  0xc1   : > { %862 = vst [vmem:[%s1133_s13] sm:$0xff] %v861_v36   ;;  %v473_v40 = vpop.f32.mrf.mxu2  ;;  %v483_v41 = vpop.f32.mrf.mxu3 }
  0xc2   : > { %899 = vst [vmem:[%s1133_s13 + $0x10] sm:$0xff] %v871_v37   ;;  %v504_v42 = vmul.f32 %v957_v22, %v473_v40  ;;  %v508_v43 = vmul.f32 %v957_v22, %v483_v41  ;;  %v456_v44 = vpop.f32.mrf.mxu0  ;;  %v466_v45 = vpop.f32.mrf.mxu1 }
  0xc3   : > { %v497_v52 = vmul.f32 %v957_v22, %v456_v44  ;;  %v501_v53 = vmul.f32 %v957_v22, %v466_v45 }
  0xc4   : > { %v524_v48 = vadd.f32 %v958_v24, %v504_v42  ;;  %v528_v49 = vadd.f32 %v958_v24, %v508_v43 }
  0xc5   : > { %v517_v60 = vadd.f32 %v958_v24, %v497_v52  ;;  %v521_v61 = vadd.f32 %v958_v24, %v501_v53 }
  0xc6   : > { %v881_v50 = vpack.c.bf16 %v524_v48, %v523_v46  ;;  %v891_v51 = vpack.c.bf16 %v528_v49, %v527_v47 }
  0xc8   : > { %901 = vst [vmem:[%s1133_s13 + $0x20] sm:$0xff] %v881_v50   ;;  %v591_v14 = vld [vmem:[%s1133_s13] sm:$0xf] (%p1059_p6)  ;;  %v593_v15 = vld [vmem:[%s1133_s13 + $0x4] sm:$0xf] (%p1059_p6) }
  0xc9   : > { %903 = vst [vmem:[%s1133_s13 + $0x30] sm:$0xff] %v891_v51   ;;  %v476_v54 = vpop.f32.mrf.mxu2  ;;  %v486_v55 = vpop.f32.mrf.mxu3  ;;  %v599_v18 = vld [vmem:[%s1133_s13 + $0x10] sm:$0xf] (%p1059_p6)  ;;  %v601_v19 = vld [vmem:[%s1133_s13 + $0x14] sm:$0xf] (%p1059_p6) }
  0xca   : > { %v458_v56 = vpop.f32.mrf.mxu0  ;;  %v468_v57 = vpop.f32.mrf.mxu1  ;;  %v505_v2 = vmul.f32 %v957_v22, %v476_v54  ;;  %v509_v3 = vmul.f32 %v957_v22, %v486_v55  ;;  %592 = vst [vmem:[%s574_s22] sm:$0xf] (%p1059_p6), %v591_v14 }
  0xcb   : > { %v498_v58 = vmul.f32 %v957_v22, %v458_v56  ;;  %v502_v59 = vmul.f32 %v957_v22, %v468_v57  ;;  %594 = vst [vmem:[%s574_s22 + $0x8] sm:$0xf] (%p1059_p6), %v593_v15 }
  0xcc   : > { %v525_v8 = vadd.f32 %v958_v24, %v505_v2  ;;  %v529_v9 = vadd.f32 %v958_v24, %v509_v3  ;;  %600 = vst [vmem:[%s574_s22 + $0x20] sm:$0xf] (%p1059_p6), %v599_v18 }
  0xcd   : > { %v518_v62 = vadd.f32 %v958_v24, %v498_v58  ;;  %v522_v63 = vadd.f32 %v958_v24, %v502_v59  ;;  %602 = vst [vmem:[%s574_s22 + $0x28] sm:$0xf] (%p1059_p6), %v601_v19 }
  0xcf   : > { %v866_v0 = vpack.c.bf16 %v518_v62, %v517_v60  ;;  %v876_v1 = vpack.c.bf16 %v522_v63, %v521_v61  ;;  %v609_v23 = vld [vmem:[%s1133_s13 + $0x24] sm:$0xf] (%p1059_p6) }
  0xd0   : > { %610 = vst [vmem:[%s574_s22 + $0x48] sm:$0xf] (%p1059_p6), %v609_v23  ;;  %v615_v26 = vld [vmem:[%s1133_s13 + $0x30] sm:$0xf] (%p1059_p6)  ;;  %v617_v27 = vld [vmem:[%s1133_s13 + $0x34] sm:$0xf] (%p1059_p6) }
  0xd1   : > { %898 = vst [vmem:[%s1133_s13 + $0x8] sm:$0xff] %v866_v0   ;;  %v478_v4 = vpop.f32.mrf.mxu2  ;;  %v488_v5 = vpop.f32.mrf.mxu3 }
  0xd2   : > { %900 = vst [vmem:[%s1133_s13 + $0x18] sm:$0xff] %v876_v1   ;;  %v506_v6 = vmul.f32 %v957_v22, %v478_v4  ;;  %v510_v7 = vmul.f32 %v957_v22, %v488_v5  ;;  %v607_v22 = vld [vmem:[%s1133_s13 + $0x20] sm:$0xf] (%p1059_p6) }
  0xd3   : > { %608 = vst [vmem:[%s574_s22 + $0x40] sm:$0xf] (%p1059_p6), %v607_v22 }
  0xd4   : > { %v526_v10 = vadd.f32 %v958_v24, %v506_v6  ;;  %v530_v11 = vadd.f32 %v958_v24, %v510_v7  ;;  %616 = vst [vmem:[%s574_s22 + $0x60] sm:$0xf] (%p1059_p6), %v615_v26 }
  0xd5   : > { %569 = sbr.rel (!%p1059_p6) target bundleno = 228 (0xe4), region = 81  ;;  %618 = vst [vmem:[%s574_s22 + $0x68] sm:$0xf] (%p1059_p6), %v617_v27 }
  0xd6   : > { %v886_v12 = vpack.c.bf16 %v526_v10, %v525_v8  ;;  %v896_v13 = vpack.c.bf16 %v530_v11, %v529_v9 }
  0xd8   : > { %902 = vst [vmem:[%s1133_s13 + $0x28] sm:$0xff] %v886_v12   ;;  %v595_v16 = vld [vmem:[%s1133_s13 + $0x8] sm:$0xf] (%p1059_p6)  ;;  %v597_v17 = vld [vmem:[%s1133_s13 + $0xc] sm:$0xf] (%p1059_p6) }
  0xd9   : > { %904 = vst [vmem:[%s1133_s13 + $0x38] sm:$0xff] %v896_v13   ;;  %v603_v20 = vld [vmem:[%s1133_s13 + $0x18] sm:$0xf] (%p1059_p6)  ;;  %v605_v21 = vld [vmem:[%s1133_s13 + $0x1c] sm:$0xf] (%p1059_p6) }
  0xda   : > { %596 = vst [vmem:[%s574_s22 + $0x10] sm:$0xf] %v595_v16 }
  0xdb   : > { %598 = vst [vmem:[%s574_s22 + $0x18] sm:$0xf] %v597_v17 }
  0xdc   : > { %604 = vst [vmem:[%s574_s22 + $0x30] sm:$0xf] %v603_v20 }
  0xdd   : > { %606 = vst [vmem:[%s574_s22 + $0x38] sm:$0xf] %v605_v21 }
  0xdf   : > { %v611_v24 = vld [vmem:[%s1133_s13 + $0x28] sm:$0xf]  ;;  %v613_v25 = vld [vmem:[%s1133_s13 + $0x2c] sm:$0xf] }
  0xe0   : > { %612 = vst [vmem:[%s574_s22 + $0x50] sm:$0xf] %v611_v24  ;;  %v619_v28 = vld [vmem:[%s1133_s13 + $0x38] sm:$0xf]  ;;  %v621_v29 = vld [vmem:[%s1133_s13 + $0x3c] sm:$0xf] }
  0xe1   : > { %614 = vst [vmem:[%s574_s22 + $0x58] sm:$0xf] %v613_v25 }
  0xe2   : > { %620 = vst [vmem:[%s574_s22 + $0x70] sm:$0xf] %v619_v28 }
  0xe3   : > { %622 = vst [vmem:[%s574_s22 + $0x78] sm:$0xf] %v621_v29 }
  0xe4 PF: > { %s14_s19 = sadd.s32 1, %s997_s19   ;;  %s1186_s15 = smov %s985_s16 }
  0xe5   : > { %p11_p12 = scmp.ge.s32.totalorder %s14_s19, 4   ;;  %s1187_s16 = smov %s1064_s25 }
  0xe6   : > { %s1188_s17 = smov %s993_s18  ;;  %s1189_s18 = smov %s1191_s20 }
  0xe7   :  { %13 = sbr.rel (!%p11_p12) target bundleno = 3 (0x3), region = 162 }

// kernel: quant_bottleneck_forward.7
= control target key start
LH: loop header
LB: loop body
LE: loop exit
PB: predicated region body
PF: predicated region fallthrough
CT: control target
= control target key end

     0   :  { %10 = vsyncpa [#allocation5], 0  ;;  %s1487_s0 = inlined_call_operand.vmem [shape: bf16[128,64], index: 0, kind: input, shape index: {}]   ;;  %s1488_s1 = inlined_call_operand.vmem [shape: bf16[64,256], index: 1, kind: input, shape index: {}]   ;;  %s1489_s2 = inlined_call_operand.vmem [shape: f32[1,256], index: 2, kind: input, shape index: {}]   ;;  %s1490_s3 = inlined_call_operand.vmem [shape: f32[1,256], index: 3, kind: input, shape index: {}]   ;;  %s1491_s4 = inlined_call_operand.vmem [shape: bf16[128,256], index: 4, kind: input, shape index: {}]   ;;  %s1492_s5 = inlined_call_operand.hbm [shape: f32[128,256], index: 5, kind: output, shape index: {}]  }
   0x1   :  { %12 = vsyncpa [#allocation5 + $0x1], 0  ;;  %s1229_s18 = smov 0   ;;  %s1231_s19 = smov 0  }
   0x2   :  { %s1233_s20 = smov 0   ;;  %s1235_s21 = smov 0  }
   0x3   :  { %s1237_s22 = smov 0   ;;  %s1239_s23 = smov 0  }
   0x4 LB: > { %s920_s24 = sadd.s32 4294967295, %s1194_s23   ;;  %s921_s25 = sadd.s32 4294967294, %s1194_s23   ;;  %s1194_s23 = sphi %s1239_s23, %s18_s23   ;;  %s1190_s22 = sphi %s1237_s22, %s1500_s22   ;;  %s1186_s21 = sphi %s1235_s21, %s1499_s21   ;;  %s1182_s20 = sphi %s1233_s20, %s1498_s20   ;;  %s1178_s19 = sphi %s1231_s19, %s1497_s19   ;;  %s1174_s18 = sphi %s1229_s18, %s1496_s18  }
   0x5   : > { %s27_s26 = sadd.s32 1, %s1190_s22  ;;  %s63_s27 = sadd.s32 1, %s1182_s20 }
   0x6   : > { %p28_p0 = scmp.ge.s32.totalorder %s27_s26, 2  ;;  %p70_p1 = scmp.ne.s32.totalorder %s1182_s20, %s1178_s19 }
   0x7   : > { %p71_p2 = scmp.eq.s32.totalorder %s1194_s23, 0  ;;  %p182_p3 = scmp.eq.s32.totalorder %s920_s24, 1 }
   0x8   : > { %s1502_s26 = smov (%p28_p0, %s27_s26), 0  ;;  %p187_p6 = scmp.ne.s32.totalorder %s1178_s19, %s1174_s18 }
   0x9   : > { %p1268_p4 = por %p71_p2, %p70_p1  ;;  %p1272_p5 = por %p182_p3, %p70_p1 }
   0xa   : > { %s60_s30 = ssub.s32 %s1190_s22, %s1502_s26  ;;  %p188_p8 = scmp.eq.s32.totalorder %s921_s25, 1 }
   0xb   : > { %p61_p7 = scmp.eq.s32.totalorder %s60_s30, 0  ;;  %p924_p10 = scmp.ge.s32.totalorder %s1194_s23, 2 }
   0xc   : > { %p1283_p9 = por %p188_p8, %p187_p6 }
   0xd   : > { %s1281_s6 = scalar_select %p61_p7, %s1182_s20, %s63_s27  }
   0xe   : > { %213 = sbr.rel (%p924_p10) target bundleno = 51 (0x33), region = 20 }
  0x13   : > { %216 = sbr.rel (!%p1268_p4) target bundleno = 31 (0x1f), region = 24  ;;  %s218_s8 = sand.u32 (%p1268_p4), 1, %s1182_s20  }
  0x14   : > { %s926_s9 = sshll.u32 (%p1268_p4), %s1190_s22, 2  ;;  %s925_s10 = sshll.u32 (%p1268_p4), %s218_s8, 5 }
  0x15   : > { %s222_s13 = scalar_lea.vmem (%p1268_p4), %s1488_s1, %s926_s9  ;;  %s220_s14 = scalar_lea.vmem (%p1268_p4), [#allocation2], %s925_s10 }
  0x16   : > { %v239_v0 = vld [vmem:[%s222_s13] sm:$0xf] (%p1268_p4)  ;;  %v241_v1 = vld [vmem:[%s222_s13 + $0x8] sm:$0xf] (%p1268_p4)  ;;  %v243_v2 = vld [vmem:[%s222_s13 + $0x10] sm:$0xf] (%p1268_p4) }
  0x17   : > { %240 = vst [vmem:[%s220_s14] sm:$0xf] (%p1268_p4), %v239_v0  ;;  %v245_v3 = vld [vmem:[%s222_s13 + $0x18] sm:$0xf] (%p1268_p4)  ;;  %v247_v4 = vld [vmem:[%s222_s13 + $0x20] sm:$0xf] (%p1268_p4) }
  0x18   : > { %242 = vst [vmem:[%s220_s14 + $0x4] sm:$0xf] %v241_v1  ;;  %v249_v5 = vld [vmem:[%s222_s13 + $0x28] sm:$0xf]  ;;  %v251_v6 = vld [vmem:[%s222_s13 + $0x30] sm:$0xf] }
  0x19   : > { %244 = vst [vmem:[%s220_s14 + $0x8] sm:$0xf] %v243_v2  ;;  %v253_v7 = vld [vmem:[%s222_s13 + $0x38] sm:$0xf] }
  0x1a   : > { %246 = vst [vmem:[%s220_s14 + $0xc] sm:$0xf] %v245_v3 }
  0x1b   : > { %248 = vst [vmem:[%s220_s14 + $0x10] sm:$0xf] %v247_v4 }
  0x1c   : > { %250 = vst [vmem:[%s220_s14 + $0x14] sm:$0xf] %v249_v5 }
  0x1d   : > { %252 = vst [vmem:[%s220_s14 + $0x18] sm:$0xf] %v251_v6 }
  0x1e   : > { %254 = vst [vmem:[%s220_s14 + $0x1c] sm:$0xf] %v253_v7 }
  0x1f PF: > { %306 = sbr.rel (!%p1268_p4) target bundleno = 51 (0x33), region = 73  ;;  %s308_s15 = sand.u32 (%p1268_p4), 1, %s1182_s20  }
  0x20   : > { %s928_s16 = sshll.u32 (%p1268_p4), %s1190_s22, 2  ;;  %s927_s17 = sshll.u32 (%p1268_p4), %s308_s15, 6 }
  0x21   : > { %s1304_s27 = scalar_lea.vmem (%p1268_p4), %s1491_s4, %s928_s16  ;;  %s310_s28 = scalar_lea.vmem (%p1268_p4), [#allocation3], %s927_s17 }
  0x22   : > { %v332_v8 = vld [vmem:[%s1304_s27] sm:$0xf] (%p1268_p4)  ;;  %v334_v9 = vld [vmem:[%s1304_s27 + $0x8] sm:$0xf] (%p1268_p4)  ;;  %v336_v10 = vld [vmem:[%s1304_s27 + $0x10] sm:$0xf] (%p1268_p4) }
  0x23   : > { %333 = vst [vmem:[%s310_s28] sm:$0xf] (%p1268_p4), %v332_v8  ;;  %v338_v11 = vld [vmem:[%s1304_s27 + $0x18] sm:$0xf] (%p1268_p4)  ;;  %v340_v12 = vld [vmem:[%s1304_s27 + $0x20] sm:$0xf] (%p1268_p4) }
  0x24   : > { %335 = vst [vmem:[%s310_s28 + $0x4] sm:$0xf] %v334_v9  ;;  %v342_v13 = vld [vmem:[%s1304_s27 + $0x28] sm:$0xf]  ;;  %v344_v14 = vld [vmem:[%s1304_s27 + $0x30] sm:$0xf] }
  0x25   : > { %337 = vst [vmem:[%s310_s28 + $0x8] sm:$0xf] %v336_v10  ;;  %v346_v15 = vld [vmem:[%s1304_s27 + $0x38] sm:$0xf]  ;;  %v348_v16 = vld [vmem:[%s1304_s27 + $0x40] sm:$0xf] }
  0x26   : > { %339 = vst [vmem:[%s310_s28 + $0xc] sm:$0xf] %v338_v11  ;;  %v350_v17 = vld [vmem:[%s1304_s27 + $0x48] sm:$0xf]  ;;  %v352_v18 = vld [vmem:[%s1304_s27 + $0x50] sm:$0xf] }
  0x27   : > { %341 = vst [vmem:[%s310_s28 + $0x10] sm:$0xf] %v340_v12  ;;  %v354_v19 = vld [vmem:[%s1304_s27 + $0x58] sm:$0xf]  ;;  %v356_v20 = vld [vmem:[%s1304_s27 + $0x60] sm:$0xf] }
  0x28   : > { %343 = vst [vmem:[%s310_s28 + $0x14] sm:$0xf] %v342_v13  ;;  %v358_v21 = vld [vmem:[%s1304_s27 + $0x68] sm:$0xf]  ;;  %v360_v22 = vld [vmem:[%s1304_s27 + $0x70] sm:$0xf] }
  0x29   : > { %345 = vst [vmem:[%s310_s28 + $0x18] sm:$0xf] %v344_v14  ;;  %v362_v23 = vld [vmem:[%s1304_s27 + $0x78] sm:$0xf] }
  0x2a   : > { %347 = vst [vmem:[%s310_s28 + $0x1c] sm:$0xf] %v346_v15 }
  0x2b   : > { %349 = vst [vmem:[%s310_s28 + $0x20] sm:$0xf] %v348_v16 }
  0x2c   : > { %351 = vst [vmem:[%s310_s28 + $0x24] sm:$0xf] %v350_v17 }
  0x2d   : > { %353 = vst [vmem:[%s310_s28 + $0x28] sm:$0xf] %v352_v18 }
  0x2e   : > { %355 = vst [vmem:[%s310_s28 + $0x2c] sm:$0xf] %v354_v19 }
  0x2f   : > { %357 = vst [vmem:[%s310_s28 + $0x30] sm:$0xf] %v356_v20 }
  0x30   : > { %359 = vst [vmem:[%s310_s28 + $0x34] sm:$0xf] %v358_v21 }
  0x31   : > { %361 = vst [vmem:[%s310_s28 + $0x38] sm:$0xf] %v360_v22 }
  0x32   : > { %363 = vst [vmem:[%s310_s28 + $0x3c] sm:$0xf] %v362_v23 }
  0x33 PF: > { %p929_p11 = scmp.ge.s32.totalorder %s1194_s23, 1  ;;  %p418_p12 = scmp.lt.s32.totalorder %s1194_s23, 3 }
  0x35   : > { %p419_p13 = pnand %p929_p11, %p418_p12 }
  0x36   : > { %s1325_s30 = sand.u32 (!%p419_p13), 1, %s1178_s19   ;;  %p480_p0 = scmp.lt.s32.totalorder (!%p419_p13), %s1186_s21, 1 }
  0x37   : > { %422 = sbr.rel (%p419_p13) target bundleno = 247 (0xf7), region = 114  ;;  %s930_s8 = sshll.u32 (!%p419_p13), %s1325_s30, 5 }
  0x38   : > { %s427_s9 = scalar_lea.vmem (!%p419_p13), [#allocation2], %s930_s8  ;;  %s931_s8 = sshll.u32 (!%p419_p13), %s1325_s30, 6 }
  0x39   : > { %s772_s28 = scalar_lea.sflag (!%p419_p13), [#allocation5], %s1325_s30  ;;  %s1136_s14 = scalar_lea.hbm (!%p419_p13), %s1492_s5, 256 }
  0x3c   : > { %v1004_v24 = vld [vmem:[%s427_s9 + $0x18] sm:$0xff]  ;;  %v1003_v25 = vld [vmem:[%s427_s9 + $0x10] sm:$0xff]  ;;  %s1330_s10 = scalar_select %p480_p0, %s1186_s21, 1  ;;  %v1002_v26 = vld [vmem:[%s427_s9 + $0x8] sm:$0xff]  ;;  %vm577_vm0 = vcmask 523264  }
  0x3d   : > { %606 = vmatpush.bf16.msra.mxu0 %v1004_v24  ;;  %1044 = vmatpush.bf16.msra.mxu1 %v1004_v24  ;;  %v1001_v27 = vld [vmem:[%s427_s9] sm:$0xff]  ;;  %v995_v29 = vld [vmem:[%s1487_s0 + $0x10] sm:$0xff]  ;;  %v994_v32 = vld [vmem:[%s1487_s0 + $0x8] sm:$0xff]  ;;  %s1380_s9 = scalar_lea.vmem [#allocation3], %s931_s8 }
  0x3e   : > { %1045 = vmatpush.bf16.msra.mxu2 %v1004_v24  ;;  %1046 = vmatpush.bf16.msra.mxu3 %v1004_v24  ;;  %s482_s13 = scalar_lea.vmem %s1489_s2, %s1330_s10  ;;  %s485_s16 = scalar_lea.vmem %s1490_s3, %s1330_s10  ;;  %v993_v28 = vld [vmem:[%s1487_s0] sm:$0xff]  ;;  %v999_v31 = vld [vmem:[%s1487_s0 + $0x30] sm:$0xff]  ;;  %v996_v33 = vld [vmem:[%s1487_s0 + $0x18] sm:$0xff] }
  0x3f   : > { %v997_v30 = vld [vmem:[%s1487_s0 + $0x20] sm:$0xff]  ;;  %v998_v34 = vld [vmem:[%s1487_s0 + $0x28] sm:$0xff]  ;;  %v1000_v35 = vld [vmem:[%s1487_s0 + $0x38] sm:$0xff] }
  0x40   : > { %v1378_v36 = vld [vmem:[%s482_s13] ss:$0 sm:$0xff]  ;;  %v1038_v38 = vld [vmem:[%s1380_s9 + $0x10] sm:$0xff]   ;;  %s932_s13 = sshll.u32 %s1325_s30, 7  ;;  %v1037_v12 = vld [vmem:[%s1380_s9 + $0x8] sm:$0xff]  }
  0x41   : > { %607 = vmatpush.bf16.msra.mxu0 %v1003_v25  ;;  %1047 = vmatpush.bf16.msra.mxu1 %v1003_v25  ;;  %v1006_v37 = vld [vmem:[%s1380_s9] sm:$0xff]   ;;  %v1015_v45 = vunpack.c.l.bf16 %v1038_v38  ;;  %v1042_v51 = vld [vmem:[%s1380_s9 + $0x30] sm:$0xff]   ;;  %s1400_s10 = scalar_lea.vmem [#allocation4], %s932_s13  ;;  %v1016_v1 = vunpack.c.h.bf16 %v1038_v38  ;;  %v1039_v13 = vld [vmem:[%s1380_s9 + $0x18] sm:$0xff]  }
  0x42   : > { %1048 = vmatpush.bf16.msra.mxu2 %v1003_v25  ;;  %1049 = vmatpush.bf16.msra.mxu3 %v1003_v25  ;;  %v1389_v39 = vld [vmem:[%s485_s16] ss:$0 sm:$0xff]  ;;  %v1007_v43 = vunpack.c.l.bf16 %v1006_v37  ;;  %v1031_v59 = vunpack.c.l.bf16 %v1042_v51  ;;  %v1008_v63 = vunpack.c.h.bf16 %v1006_v37  ;;  %v1032_v21 = vunpack.c.h.bf16 %v1042_v51  ;;  %v1041_v37 = vld [vmem:[%s1380_s9 + $0x28] sm:$0xff]   ;;  %v1043_v38 = vld [vmem:[%s1380_s9 + $0x38] sm:$0xff]   ;;  %s990_s16 = sshll.u32 %s1186_s21, 3  ;;  %s786_s25 = sshll.u32 %s1400_s10, 4  ;;  %s787_s25 = int_to_ptr.vmem [resolvable:$true] %s786_s25 }
  0x43   : > { %v1040_v50 = vld [vmem:[%s1380_s9 + $0x20] sm:$0xff]   ;;  %v1011_v25 = vunpack.c.l.bf16 %v1037_v12  ;;  %s785_s21 = scalar_lea.hbm %s1492_s5, %s990_s16 }
  0x44   : > { %v1023_v57 = vunpack.c.l.bf16 %v1040_v50  ;;  %v1024_v19 = vunpack.c.h.bf16 %v1040_v50  ;;  %s788_s27 = sshll.u32 %s785_s21, 4  ;;  %s789_s27 = int_to_ptr.hbm [resolvable:$true] %s788_s27 }
  0x45   : > { %608 = vmatpush.bf16.msra.mxu0 %v1002_v26  ;;  %1050 = vmatpush.bf16.msra.mxu1 %v1002_v26  ;;  %s1130_s8 = sshra.s32 %s789_s27, 4  ;;  %s1131_s8 = int_to_ptr.hbm [resolvable:$true] %s1130_s8 }
  0x46   : > { %1051 = vmatpush.bf16.msra.mxu2 %v1002_v26  ;;  %1052 = vmatpush.bf16.msra.mxu3 %v1002_v26  ;;  %s1132_s11 = scalar_lea.hbm %s1131_s8, 128  ;;  %p1137_p4 = scmp.lt.s32.totalorder %s1131_s8, %s1492_s5 }
  0x47   : > { %p1133_p1 = scmp.ne.s32.totalorder %s1131_s8, %s1132_s11  ;;  %p1138_p6 = scmp.lt.s32.totalorder %s1136_s14, %s1132_s11 }
  0x49   : > { %609 = vmatpush.bf16.msra.mxu0 %v1001_v27  ;;  %1053 = vmatpush.bf16.msra.mxu1 %v1001_v27  ;;  %p1134_p2 = pnand %p1133_p1, %p1272_p5  ;;  %p1139_p7 = por %p1138_p6, %p1137_p4 }
  0x4a   : > { %1054 = vmatpush.bf16.msra.mxu2 %v1001_v27  ;;  %1055 = vmatpush.bf16.msra.mxu3 %v1001_v27  ;;  %v1019_v27 = vunpack.c.l.bf16 %v1039_v13 }
  0x4b   : > { %p1135_p3 = pneg %p1134_p2 }
  0x4c   : > { %981 = vmatmul.msk.bf16.vlgmr.msra.gmra.mxu0 %vm577_vm0, %v993_v28  ;;  %983 = vmatmul.msk.bf16.vlgmr.msra.gmra.mxu1 %vm577_vm0, %v995_v29 }
  0x4d   : > { %985 = vmatmul.msk.bf16.vlgmr.msra.gmra.mxu2 %vm577_vm0, %v997_v30  ;;  %987 = vmatmul.msk.bf16.vlgmr.msra.gmra.mxu3 %vm577_vm0, %v999_v31  ;;  %p1140_p8 = pnand %p1139_p7, %p1135_p3 }
  0x5c   : > { %982 = vmatmul.msk.bf16.gmra.mxu0 %vm577_vm0, %v994_v32  ;;  %984 = vmatmul.msk.bf16.gmra.mxu1 %vm577_vm0, %v996_v33 }
  0x5d   : > { %986 = vmatmul.msk.bf16.gmra.mxu2 %vm577_vm0, %v998_v34  ;;  %988 = vmatmul.msk.bf16.gmra.mxu3 %vm577_vm0, %v1000_v35 }
  0xc9   : > { %v611_v40 = vpop.f32.mrf.mxu0  ;;  %v621_v41 = vpop.f32.mrf.mxu1 }
  0xca   : > { %v655_v42 = vmul.f32 %v1378_v36, %v611_v40  ;;  %v659_v44 = vmul.f32 %v1378_v36, %v621_v41 }
  0xcc   : > { %v675_v46 = vadd.f32 %v1389_v39, %v655_v42  ;;  %v679_v47 = vadd.f32 %v1389_v39, %v659_v44 }
  0xce   : > { %v723_v48 = vadd.f32 %v1007_v43, %v675_v46  ;;  %v727_v49 = vadd.f32 %v1015_v45, %v679_v47  ;;  %v1027_v47 = vunpack.c.l.bf16 %v1041_v37 }
  0xd0   : > { %v739_v52 = vmax.f32 %v723_v48, 0.0  ;;  %v743_v53 = vmax.f32 %v727_v49, 0.0  ;;  %v631_v54 = vpop.f32.mrf.mxu2  ;;  %v641_v55 = vpop.f32.mrf.mxu3  ;;  %v1035_v49 = vunpack.c.l.bf16 %v1043_v38 }
  0xd1   : > { %v663_v56 = vmul.f32 %v1378_v36, %v631_v54  ;;  %v667_v58 = vmul.f32 %v1378_v36, %v641_v55  ;;  %v613_v60 = vpop.f32.mrf.mxu0  ;;  %v623_v61 = vpop.f32.mrf.mxu1  ;;  %v1020_v55 = vunpack.c.h.bf16 %v1039_v13 }
  0xd2   : > { %755 = vst [vmem:[%s1400_s10] sm:$0xff] %v739_v52  ;;  %v656_v62 = vmul.f32 %v1378_v36, %v613_v60  ;;  %v660_v0 = vmul.f32 %v1378_v36, %v623_v61 }
  0xd3   : > { %759 = vst [vmem:[%s1400_s10 + $0x20] sm:$0xff] %v743_v53  ;;  %v683_v2 = vadd.f32 %v1389_v39, %v663_v56  ;;  %v687_v3 = vadd.f32 %v1389_v39, %v667_v58  ;;  %v1012_v53 = vunpack.c.h.bf16 %v1037_v12 }
  0xd4   : > { %v676_v4 = vadd.f32 %v1389_v39, %v656_v62  ;;  %v680_v5 = vadd.f32 %v1389_v39, %v660_v0 }
  0xd5   : > { %v731_v6 = vadd.f32 %v1023_v57, %v683_v2  ;;  %v735_v7 = vadd.f32 %v1031_v59, %v687_v3 }
  0xd6   : > { %v724_v8 = vadd.f32 %v1008_v63, %v676_v4  ;;  %v728_v9 = vadd.f32 %v1016_v1, %v680_v5 }
  0xd7   : > { %v747_v10 = vmax.f32 %v731_v6, 0.0  ;;  %v751_v11 = vmax.f32 %v735_v7, 0.0  ;;  %v1028_v7 = vunpack.c.h.bf16 %v1041_v37 }
  0xd8   : > { %v740_v14 = vmax.f32 %v724_v8, 0.0  ;;  %v744_v15 = vmax.f32 %v728_v9, 0.0  ;;  %v633_v16 = vpop.f32.mrf.mxu2  ;;  %v643_v17 = vpop.f32.mrf.mxu3  ;;  %v1036_v9 = vunpack.c.h.bf16 %v1043_v38 }
  0xd9   : > { %763 = vst [vmem:[%s1400_s10 + $0x40] sm:$0xff] %v747_v10  ;;  %v664_v18 = vmul.f32 %v1378_v36, %v633_v16  ;;  %v668_v20 = vmul.f32 %v1378_v36, %v643_v17  ;;  %v616_v22 = vpop.f32.mrf.mxu0  ;;  %v626_v23 = vpop.f32.mrf.mxu1 }
  0xda   : > { %767 = vst [vmem:[%s1400_s10 + $0x60] sm:$0xff] %v751_v11  ;;  %v657_v24 = vmul.f32 %v1378_v36, %v616_v22  ;;  %v661_v26 = vmul.f32 %v1378_v36, %v626_v23 }
  0xdb   : > { %756 = vst [vmem:[%s1400_s10 + $0x8] sm:$0xff] %v740_v14  ;;  %v684_v28 = vadd.f32 %v1389_v39, %v664_v18  ;;  %v688_v29 = vadd.f32 %v1389_v39, %v668_v20 }
  0xdc   : > { %760 = vst [vmem:[%s1400_s10 + $0x28] sm:$0xff] %v744_v15  ;;  %v677_v30 = vadd.f32 %v1389_v39, %v657_v24  ;;  %v681_v31 = vadd.f32 %v1389_v39, %v661_v26 }
  0xdd   : > { %v732_v32 = vadd.f32 %v1024_v19, %v684_v28  ;;  %v736_v33 = vadd.f32 %v1032_v21, %v688_v29 }
  0xde   : > { %v725_v34 = vadd.f32 %v1011_v25, %v677_v30  ;;  %v729_v35 = vadd.f32 %v1019_v27, %v681_v31 }
  0xdf   : > { %v748_v40 = vmax.f32 %v732_v32, 0.0  ;;  %v752_v41 = vmax.f32 %v736_v33, 0.0 }
  0xe0   : > { %v741_v42 = vmax.f32 %v725_v34, 0.0  ;;  %v745_v43 = vmax.f32 %v729_v35, 0.0  ;;  %v636_v44 = vpop.f32.mrf.mxu2  ;;  %v646_v45 = vpop.f32.mrf.mxu3 }
  0xe1   : > { %764 = vst [vmem:[%s1400_s10 + $0x48] sm:$0xff] %v748_v40  ;;  %v665_v46 = vmul.f32 %v1378_v36, %v636_v44  ;;  %v669_v48 = vmul.f32 %v1378_v36, %v646_v45  ;;  %v618_v50 = vpop.f32.mrf.mxu0  ;;  %v628_v51 = vpop.f32.mrf.mxu1 }
  0xe2   : > { %768 = vst [vmem:[%s1400_s10 + $0x68] sm:$0xff] %v752_v41  ;;  %v658_v52 = vmul.f32 %v1378_v36, %v618_v50  ;;  %v662_v54 = vmul.f32 %v1378_v36, %v628_v51 }
  0xe3   : > { %757 = vst [vmem:[%s1400_s10 + $0x10] sm:$0xff] %v741_v42  ;;  %v685_v56 = vadd.f32 %v1389_v39, %v665_v46  ;;  %v689_v57 = vadd.f32 %v1389_v39, %v669_v48 }
  0xe4   : > { %761 = vst [vmem:[%s1400_s10 + $0x30] sm:$0xff] %v745_v43  ;;  %v678_v58 = vadd.f32 %v1389_v39, %v658_v52  ;;  %v682_v59 = vadd.f32 %v1389_v39, %v662_v54 }
  0xe5   : > { %v733_v60 = vadd.f32 %v1027_v47, %v685_v56  ;;  %v737_v61 = vadd.f32 %v1035_v49, %v689_v57 }
  0xe6   : > { %v726_v62 = vadd.f32 %v1012_v53, %v678_v58  ;;  %v730_v63 = vadd.f32 %v1020_v55, %v682_v59 }
  0xe7   : > { %v749_v0 = vmax.f32 %v733_v60, 0.0  ;;  %v753_v1 = vmax.f32 %v737_v61, 0.0 }
  0xe8   : > { %v742_v2 = vmax.f32 %v726_v62, 0.0  ;;  %v746_v3 = vmax.f32 %v730_v63, 0.0  ;;  %v638_v4 = vpop.f32.mrf.mxu2  ;;  %v648_v5 = vpop.f32.mrf.mxu3 }
  0xe9   : > { %765 = vst [vmem:[%s1400_s10 + $0x50] sm:$0xff] %v749_v0  ;;  %v666_v6 = vmul.f32 %v1378_v36, %v638_v4  ;;  %v670_v8 = vmul.f32 %v1378_v36, %v648_v5 }
  0xea   : > { %769 = vst [vmem:[%s1400_s10 + $0x70] sm:$0xff] %v753_v1 }
  0xeb   : > { %758 = vst [vmem:[%s1400_s10 + $0x18] sm:$0xff] %v742_v2  ;;  %v686_v10 = vadd.f32 %v1389_v39, %v666_v6  ;;  %v690_v11 = vadd.f32 %v1389_v39, %v670_v8 }
  0xec   : > { %762 = vst [vmem:[%s1400_s10 + $0x38] sm:$0xff] %v746_v3 }
  0xed   : > { %v734_v12 = vadd.f32 %v1028_v7, %v686_v10  ;;  %v738_v36 = vadd.f32 %v1036_v9, %v690_v11 }
  0xef   : > { %v750_v13 = vmax.f32 %v734_v12, 0.0  ;;  %v754_v14 = vmax.f32 %v738_v36, 0.0 }
  0xf1   : > { %766 = vst [vmem:[%s1400_s10 + $0x58] sm:$0xff] %v750_v13 }
  0xf2   : > { %770 = vst [vmem:[%s1400_s10 + $0x78] sm:$0xff] %v754_v14 }
  0xf3   : > { %1143 = shalt.err (!%p1140_p8)
}
  0xf4   : > { %s1196_s30 = smov 128   ;;  %s1197_s10 = smov 256  }
  0xf5   : > { %s1198_s16 = smov 8  }
  0xf6   : > { %1056 = dma.vmem_to_hbm [thread:$0]  (%p1272_p5), %s787_s25, 2048, %s789_s27, %s772_s28, %s1196_s30, %s1197_s10, %s1198_s16  }
  0xf7 PF: > { %s803_s17 = sand.u32 1, %s1174_s18   ;;  %p1059_p11 = pnand %p924_p10, %p1283_p9 }
  0xf8   : > { %s804_s24 = scalar_lea.sflag [#allocation5], %s803_s17 }
  0xf9   : > { %p1060_p12 = pneg %p1059_p11 }
  0xfb   : > { %1169 = dma.done.wait (%p1060_p12), %s804_s24, 2048  }
  0xfc   : > { %1171 = vsyncadd (%p1060_p12), %s804_s24, 4294965248  ;;  %s18_s23 = sadd.s32 1, %s1194_s23   ;;  %s1496_s18 = smov %s1178_s19 }
  0xfd   : > { %p15_p13 = scmp.ge.s32.totalorder %s18_s23, 4   ;;  %s1497_s19 = smov %s1182_s20 }
  0xfe   : > { %s1498_s20 = smov %s1281_s6  ;;  %s1499_s21 = smov %s1190_s22 }
  0xff   : > { %s1500_s22 = smov %s1502_s26  ;;  %17 = sbr.rel (!%p15_p13) target bundleno = 4 (0x4), region = 179 }
 0x104   :  { %810 = vsyncpa [#allocation5], 1 }
 0x105   :  { %812 = vsyncpa [#allocation5 + $0x1], 1 }

// kernel: quant_bottleneck_forward.5
= control target key start
LH: loop header
LB: loop body
LE: loop exit
PB: predicated region body
PF: predicated region fallthrough
CT: control target
= control target key end

     0   :  { %s2105_s18 = smov 0   ;;  %s2107_s19 = smov 0   ;;  %s2559_s0 = inlined_call_operand.vmem [shape: bf16[2,74,128], index: 0, kind: input, shape index: {}]   ;;  %s2560_s1 = inlined_call_operand.vmem [shape: bf16[2,66,128], index: 1, kind: input, shape index: {}]   ;;  %s2561_s2 = inlined_call_operand.vmem [shape: bf16[768,64], index: 2, kind: input, shape index: {}]   ;;  %s2562_s3 = inlined_call_operand.vmem [shape: f32[1,64], index: 3, kind: input, shape index: {}]   ;;  %s2563_s4 = inlined_call_operand.vmem [shape: f32[1,64], index: 4, kind: input, shape index: {}]   ;;  %s2564_s5 = inlined_call_operand.vmem [shape: bf16[2,64,64], index: 5, kind: output, shape index: {}]  }
   0x1   :  { %s2109_s20 = smov 0  }
   0x2 LB: > { %s27_s21 = sadd.s32 1, %s2068_s19  ;;  %p1636_p0 = scmp.ge.s32.totalorder %s2072_s20, 1  ;;  %s2072_s20 = sphi %s2109_s20, %s15_s20   ;;  %s2068_s19 = sphi %s2107_s19, %s2572_s19   ;;  %s2064_s18 = sphi %s2105_s18, %s2571_s18  }
   0x3   : > { %p29_p1 = scmp.ge.s32.totalorder %s27_s21, 2  ;;  %p236_p2 = scmp.lt.s32.totalorder %s2072_s20, 3 }
   0x5   : > { %s2574_s21 = smov (%p29_p1, %s27_s21), 0  ;;  %p237_p3 = pnand %p1636_p0, %p236_p2 }
   0x6   : > { %p282_p4 = scmp.lt.s32.totalorder (!%p237_p3), %s2064_s18, 1 }
   0x7   : > { %240 = sbr.rel (%p237_p3) target bundleno = 314 (0x13a), region = 40 }
   0xc   : > { %v1899_v0 = vld [vmem:[%s2561_s2 + $0x38] sm:$0xff]  ;;  %v310_v2 = vlaneseq  ;;  %v1898_v3 = vld [vmem:[%s2561_s2 + $0x30] sm:$0xff]  ;;  %s2576_s18 = smov (!%p282_p4, %s2064_s18), 1  ;;  %v1897_v6 = vld [vmem:[%s2561_s2 + $0x28] sm:$0xff]  ;;  %v2074_v27 = vmov 0.0   ;;  %vm576_vm9 = vcmask 523264  }
   0xd   : > { %v1911_v1 = vld [vmem:[%s2561_s2 + $0x78] sm:$0xff]  ;;  %2005 = vmatpush.bf16.msra.mxu2 %v1899_v0  ;;  %v1910_v4 = vld [vmem:[%s2561_s2 + $0x70] sm:$0xff]  ;;  %547 = vmatpush.bf16.msra.mxu0 %v1899_v0  ;;  %v1909_v7 = vld [vmem:[%s2561_s2 + $0x68] sm:$0xff]  ;;  %s2021_s9 = smul.u32 40, %s2576_s18  ;;  %vm633_vm4 = vsmask.f32 7424 }
   0xe   : > { %2013 = vmatpush.bf16.msra.mxu3 %v1911_v1  ;;  %722 = vmatpush.bf16.msra.mxu1 %v1911_v1  ;;  %v2137_v5 = vshrl.u32 %v310_v2, 7  ;;  %v1896_v9 = vld [vmem:[%s2561_s2 + $0x20] sm:$0xff]  ;;  %v1895_v13 = vld [vmem:[%s2561_s2 + $0x18] sm:$0xff]  ;;  %v1894_v19 = vld [vmem:[%s2561_s2 + $0x10] sm:$0xff]  ;;  %s2022_s25 = smul.u32 36, %s2576_s18  ;;  %s1891_s28 = sshll.u32 %s2576_s18, 5 }
   0xf   : > { %v1908_v10 = vld [vmem:[%s2561_s2 + $0x60] sm:$0xff]  ;;  %s2157_s16 = scalar_lea.vmem %s2559_s0, %s2021_s9  ;;  %v1907_v14 = vld [vmem:[%s2561_s2 + $0x58] sm:$0xff]  ;;  %v1906_v21 = vld [vmem:[%s2561_s2 + $0x50] sm:$0xff]  ;;  %s2502_s6 = scalar_lea.vmem %s2564_s5, %s1891_s28  ;;  %vm1491_vm10 = vcmask 519168  }
  0x10   : > { %v315_v8 = vadd.s32 32, %v2137_v5  ;;  %v316_v11 = vadd.s32 40, %v2137_v5  ;;  %v1902_v16 = vld [vmem:[%s2157_s16 + $0x10] sm:$0xff]  ;;  %v312_v17 = vadd.s32 8, %v2137_v5  ;;  %v323_v20 = vand.u32 7, %v2137_v5  ;;  %v2178_v22 = vld [vmem:[%s2157_s16 + $0x18] sm:$0xff]  ;;  %s2344_s11 = scalar_lea.vmem %s2560_s1, %s2022_s25 }
  0x11   : > { %2006 = vmatpush.bf16.msra.mxu2 %v1898_v3  ;;  %548 = vmatpush.bf16.msra.mxu0 %v1898_v3  ;;  %v2168_v18 = vld [vmem:[%s2157_s16 + $0x10] sm:$0xff]   ;;  %v650_v23 = vshll.u32 %v1902_v16, 16  ;;  %v1900_v25 = vld [vmem:[%s2157_s16] sm:$0xff]  ;;  %v2195_v33 = vld [vmem:[%s2157_s16 + $0x8] sm:$0xff]  ;;  %v654_v38 = vshrl.u32 %v1902_v16, 16  ;;  %v658_v39 = vshll.u32 %v2178_v22, 16 }
  0x12   : > { %2014 = vmatpush.bf16.msra.mxu3 %v1910_v4  ;;  %723 = vmatpush.bf16.msra.mxu1 %v1910_v4  ;;  %v351_v12 = vand.u32 7, %v315_v8  ;;  %v358_v15 = vand.u32 7, %v316_v11  ;;  %v330_v24 = vand.u32 7, %v312_v17  ;;  %v1962_v26 = vunpack.c.l.bf16 %v2168_v18  ;;  %v1953_v32 = vld [vmem:[%s2157_s16] sm:$0xff]   ;;  %v1893_v35 = vld [vmem:[%s2561_s2 + $0x8] sm:$0xff]  ;;  %v1919_v55 = vld [vmem:[%s2561_s2 + $0xb8] sm:$0xff] }
  0x13   : > { %v1963_v29 = vunpack.c.h.bf16 %v2168_v18  ;;  %vm2189_vm2 = vcmp.ne.s32.totalorder %v323_v20, 0  ;;  %v637_v34 = vshll.u32 %v1900_v25, 16  ;;  %v1905_v36 = vld [vmem:[%s2561_s2 + $0x48] sm:$0xff]  ;;  %v2203_v37 = vrot.slane %v650_v23, 1  ;;  %v1892_v51 = vld [vmem:[%s2561_s2] sm:$0xff]  ;;  %v1931_v56 = vld [vmem:[%s2561_s2 + $0xf8] sm:$0xff] }
  0x14   : > { %vm419_vm0 = vcmp.ne.s32.totalorder %v351_v12, 0  ;;  %vm420_vm1 = vcmp.ne.s32.totalorder %v358_v15, 0  ;;  %vm416_vm3 = vcmp.ne.s32.totalorder %v330_v24, 0  ;;  %v317_v41 = vadd.s32 48, %v2137_v5  ;;  %v1904_v52 = vld [vmem:[%s2561_s2 + $0x40] sm:$0xff]  ;;  %v1939_v3 = vld [vmem:[%s2561_s2 + $0x138] sm:$0xff] }
  0x15   : > { %2007 = vmatpush.bf16.msra.mxu2 %v1897_v6  ;;  %549 = vmatpush.bf16.msra.mxu0 %v1897_v6  ;;  %v2183_v28 = vsel %vm419_vm0, 1.0, %v2074_v27  ;;  %v2187_v30 = vsel %vm420_vm1, 1.0, %v2074_v27  ;;  %v318_v42 = vadd.s32 56, %v2137_v5  ;;  %v2217_v44 = vsel %vm2189_vm2, 1.0, %v2074_v27  ;;  %v593_v57 = vld [vmem:[%s2157_s16 + $0x20] sm:$0x1] }
  0x16   : > { %2015 = vmatpush.bf16.msra.mxu3 %v1909_v7  ;;  %724 = vmatpush.bf16.msra.mxu1 %v1909_v7  ;;  %v475_v40 = vmul.f32 %v1962_v26, %v2183_v28  ;;  %v476_v43 = vmul.f32 %v1963_v29, %v2187_v30  ;;  %v1954_v45 = vunpack.c.l.bf16 %v1953_v32  ;;  %v1955_v46 = vunpack.c.h.bf16 %v1953_v32  ;;  %v1951_v4 = vld [vmem:[%s2561_s2 + $0x178] sm:$0xff]  ;;  %v1918_v8 = vld [vmem:[%s2561_s2 + $0xb0] sm:$0xff]  ;;  %v1917_v20 = vld [vmem:[%s2561_s2 + $0xa8] sm:$0xff] }
  0x17   : > { %v2220_v47 = vsel %vm416_vm3, 1.0, %v2074_v27  ;;  %v635_v48 = vshrl.u32 %v1900_v25, 16  ;;  %v639_v49 = vrot.slane %v637_v34, 1  ;;  %v642_v50 = vshll.u32 %v2195_v33, 16  ;;  %v1938_v15 = vld [vmem:[%s2561_s2 + $0x130] sm:$0xff]  ;;  %v2297_v32 = vld [vmem:[%s2157_s16 + $0x8] sm:$0xff]  }
  0x18   : > { %v656_v53 = vor.u32 %v654_v38, %v2203_v37  ;;  %v2230_v54 = vrot.slane %v658_v39, 1  ;;  %v365_v58 = vand.u32 7, %v317_v41  ;;  %v471_v59 = vmul.f32 %v1954_v45, %v2217_v44  ;;  %v1950_v16 = vld [vmem:[%s2561_s2 + $0x170] sm:$0xff]  ;;  %v1949_v38 = vld [vmem:[%s2561_s2 + $0x168] sm:$0xff]  ;;  %v1916_v39 = vld [vmem:[%s2561_s2 + $0xa0] sm:$0xff] }
  0x19   : > { %2008 = vmatpush.bf16.msra.mxu2 %v1896_v9  ;;  %550 = vmatpush.bf16.msra.mxu0 %v1896_v9  ;;  %v472_v60 = vmul.f32 %v1955_v46, %v2220_v47  ;;  %v481_v61 = vpack.c.bf16 %v476_v43, %v475_v40  ;;  %v372_v62 = vand.u32 7, %v318_v42  ;;  %v640_v63 = vor.u32 %v639_v49, %v635_v48  ;;  %v1930_v9 = vld [vmem:[%s2561_s2 + $0xf0] sm:$0xff]  ;;  %v1109_v11 = vld [vmem:[%s2157_s16 + $0x4] sm:$0xf]  ;;  %v2001_v18 = vld [vmem:[%s2344_s11 + $0x18] sm:$0xff]  }
  0x1a   : > { %2016 = vmatpush.bf16.msra.mxu3 %v1908_v10  ;;  %725 = vmatpush.bf16.msra.mxu1 %v1908_v10  ;;  %v2241_v0 = vrot.slane %v642_v50, 1  ;;  %v661_v1 = vsel %vm633_vm4, %v656_v53, %v2230_v54  ;;  %v627_v2 = vunpack.c.l.b16 %v593_v57  ;;  %v313_v6 = vadd.s32 16, %v2137_v5 }
  0x1b   : > { %v314_v7 = vadd.s32 24, %v2137_v5  ;;  %v479_v10 = vpack.c.bf16 %v472_v60, %v471_v59  ;;  %vm2259_vm5 = vcmp.ne.s32.totalorder %v365_v58, 0  ;;  %v2264_v5 = vld [vmem:[%s2157_s16 + $0x18] sm:$0xff]   ;;  %vm2268_vm6 = vcmp.ne.s32.totalorder %v372_v62, 0  ;;  %v1920_v58 = vld [vmem:[%s2344_s11] sm:$0xff]  ;;  %v1926_v62 = vld [vmem:[%s2561_s2 + $0xd0] sm:$0xff] }
  0x1c   : > { %v645_v12 = vsel %vm633_vm4, %v640_v63, %v2241_v0  ;;  %v337_v17 = vand.u32 7, %v313_v6  ;;  %v1966_v23 = vunpack.c.l.bf16 %v2264_v5  ;;  %v2288_v24 = vsel %vm2259_vm5, 1.0, %v2074_v27  ;;  %v1935_v59 = vld [vmem:[%s2561_s2 + $0x118] sm:$0xff]  ;;  %v1934_v6 = vld [vmem:[%s2561_s2 + $0x110] sm:$0xff] }
  0x1d   : > { %2009 = vmatpush.bf16.msra.mxu2 %v1895_v13  ;;  %551 = vmatpush.bf16.msra.mxu0 %v1895_v13  ;;  %v2293_v25 = vsel %vm2268_vm6, 1.0, %v2074_v27  ;;  %v1967_v31 = vunpack.c.h.bf16 %v2264_v5  ;;  %v662_v34 = vshrl.u32 %v2178_v22, 16  ;;  %v1928_v22 = vld [vmem:[%s2561_s2 + $0xe0] sm:$0xff]  ;;  %v1958_v41 = vunpack.c.l.bf16 %v2297_v32  ;;  %v1947_v60 = vld [vmem:[%s2561_s2 + $0x158] sm:$0xff] }
  0x1e   : > { %2017 = vmatpush.bf16.msra.mxu3 %v1907_v14  ;;  %726 = vmatpush.bf16.msra.mxu1 %v1907_v14  ;;  %v632_v14 = vpack.c.b16 %v627_v2, %v627_v2  ;;  %vm417_vm7 = vcmp.ne.s32.totalorder %v337_v17, 0  ;;  %v477_v40 = vmul.f32 %v1966_v23, %v2288_v24  ;;  %v1959_v42 = vunpack.c.h.bf16 %v2297_v32  ;;  %v1940_v2 = vld [vmem:[%s2157_s16 + $0x4] sm:$0xff] }
  0x1f   : > { %v478_v43 = vmul.f32 %v1967_v31, %v2293_v25  ;;  %v2322_v45 = vsel %vm417_vm7, 1.0, %v2074_v27  ;;  %v646_v48 = vshrl.u32 %v2195_v33, 16  ;;  %v664_v49 = vor.u32 %v662_v34, %v2230_v54  ;;  %v1927_v33 = vld [vmem:[%s2561_s2 + $0xd8] sm:$0xff]  ;;  %v1933_v17 = vld [vmem:[%s2561_s2 + $0x108] sm:$0xff] }
  0x20   : > { %v473_v53 = vmul.f32 %v1958_v41, %v2322_v45  ;;  %v1305_v13 = vshll.u32 %v1940_v2, 16 }
  0x21   : > { %2010 = vmatpush.bf16.msra.mxu2 %v1894_v19  ;;  %552 = vmatpush.bf16.msra.mxu0 %v1894_v19  ;;  %v344_v19 = vand.u32 7, %v314_v7  ;;  %v1946_v7 = vld [vmem:[%s2561_s2 + $0x150] sm:$0xff] }
  0x22   : > { %2018 = vmatpush.bf16.msra.mxu3 %v1906_v21  ;;  %727 = vmatpush.bf16.msra.mxu1 %v1906_v21  ;;  %v1929_v21 = vld [vmem:[%s2561_s2 + $0xe8] sm:$0xff] }
  0x23   : > { %vm418_vm8 = vcmp.ne.s32.totalorder %v344_v19, 0  ;;  %v1945_v19 = vld [vmem:[%s2561_s2 + $0x148] sm:$0xff] }
  0x24   : > { %v2325_v46 = vsel %vm418_vm8, 1.0, %v2074_v27  ;;  %v1915_v27 = vld [vmem:[%s2561_s2 + $0x98] sm:$0xff] }
  0x25   : > { %2011 = vmatpush.bf16.msra.mxu2 %v1893_v35  ;;  %553 = vmatpush.bf16.msra.mxu0 %v1893_v35  ;;  %v666_v35 = vshll.u32 %v632_v14, 16  ;;  %v474_v54 = vmul.f32 %v1959_v42, %v2325_v46  ;;  %v969_v14 = vshrl.u32 %v1920_v58, 16 }
  0x26   : > { %2019 = vmatpush.bf16.msra.mxu3 %v1905_v36  ;;  %728 = vmatpush.bf16.msra.mxu1 %v1905_v36  ;;  %v1937_v36 = vld [vmem:[%s2561_s2 + $0x128] sm:$0xff] }
  0x27   : > { %v668_v50 = vrot.slane %v666_v35, 1  ;;  %v480_v63 = vpack.c.bf16 %v474_v54, %v473_v53  ;;  %v1117_v35 = vunpack.c.l.bf16 %v1109_v11  ;;  %v1923_v11 = vld [vmem:[%s2344_s11 + $0x18] sm:$0xff] }
  0x29   : > { %2012 = vmatpush.bf16.msra.mxu2 %v1892_v51  ;;  %554 = vmatpush.bf16.msra.mxu0 %v1892_v51  ;;  %v1936_v51 = vld [vmem:[%s2561_s2 + $0x120] sm:$0xff]  ;;  %v669_v57 = vsel %vm633_vm4, %v664_v49, %v668_v50  ;;  %v1125_v50 = vmul.f32 %v2217_v44, %v1117_v35 }
  0x2a   : > { %2020 = vmatpush.bf16.msra.mxu3 %v1904_v52  ;;  %729 = vmatpush.bf16.msra.mxu1 %v1904_v52  ;;  %v1948_v52 = vld [vmem:[%s2561_s2 + $0x160] sm:$0xff] }
  0x2b   : > { %v1944_v49 = vld [vmem:[%s2561_s2 + $0x140] sm:$0xff] }
  0x2c   : > { %565 = vmatmul.bf16.vlgmr.msra.gmra.mxu2 %v481_v61  ;;  %555 = vmatmul.bf16.vlgmr.msra.gmra.mxu0 %v479_v10  ;;  %v1914_v61 = vld [vmem:[%s2561_s2 + $0x90] sm:$0xff] }
  0x2d   : > { %867 = vmatpush.bf16.msrb.mxu2 %v1919_v55  ;;  %740 = vmatmul.bf16.vlgmr.msra.gmra.mxu3 %v661_v1  ;;  %v482_v55 = vpack.c.bf16 %v478_v43, %v477_v40 }
  0x2e   : > { %1056 = vmatpush.bf16.msrb.mxu3 %v1931_v56  ;;  %1201 = vmatpush.bf16.msrb.mxu0 %v1939_v3  ;;  %v648_v56 = vor.u32 %v646_v48, %v2241_v0  ;;  %v1969_v0 = vld [vmem:[%s2344_s11] sm:$0xff]   ;;  %v2372_v3 = vld [vmem:[%s2344_s11 + $0x8] sm:$0xff] }
  0x2f   : > { %1390 = vmatpush.bf16.msrb.mxu1 %v1951_v4  ;;  %v971_v4 = vshll.u32 %v1920_v58, 16  ;;  %v1971_v10 = vunpack.c.h.bf16 %v1969_v0  ;;  %v1932_v48 = vld [vmem:[%s2561_s2 + $0x100] sm:$0xff] }
  0x30   : > { %730 = vmatmul.bf16.vlgmr.msra.gmra.mxu1 %v645_v12  ;;  %v653_v1 = vsel %vm633_vm4, %v648_v56, %v2203_v37  ;;  %v1913_v37 = vld [vmem:[%s2561_s2 + $0x88] sm:$0xff] }
  0x31   : > { %868 = vmatpush.bf16.msrb.mxu2 %v1918_v8  ;;  %v1925_v8 = vld [vmem:[%s2561_s2 + $0xc8] sm:$0xff] }
  0x32   : > { %1057 = vmatpush.bf16.msrb.mxu3 %v1930_v9  ;;  %1202 = vmatpush.bf16.msrb.mxu0 %v1938_v15  ;;  %v1970_v9 = vunpack.c.l.bf16 %v1969_v0  ;;  %v1941_v12 = vld [vmem:[%s2157_s16 + $0xc] sm:$0xff]  ;;  %v973_v15 = vrot.slane %v971_v4, 1 }
  0x33   : > { %1391 = vmatpush.bf16.msrb.mxu1 %v1950_v16  ;;  %v976_v16 = vshll.u32 %v2372_v3, 16  ;;  %v1999_v56 = vld [vmem:[%s2344_s11 + $0x8] sm:$0xff]  }
  0x34   : > { %v791_v34 = vmul.f32 %v1970_v9, %v2217_v44  ;;  %v974_v40 = vor.u32 %v973_v15, %v969_v14  ;;  %v1974_v44 = vunpack.c.l.bf16 %v1999_v56  ;;  %v1975_v58 = vunpack.c.h.bf16 %v1999_v56 }
  0x35   : > { %869 = vmatpush.bf16.msrb.mxu2 %v1917_v20  ;;  %v1912_v20 = vld [vmem:[%s2561_s2 + $0x80] sm:$0xff]  ;;  %v978_v43 = vrot.slane %v976_v16, 1 }
  0x36   : > { %1058 = vmatpush.bf16.msrb.mxu3 %v1929_v21  ;;  %1203 = vmatpush.bf16.msrb.mxu0 %v1937_v36  ;;  %v1924_v21 = vld [vmem:[%s2561_s2 + $0xc0] sm:$0xff]  ;;  %v792_v36 = vmul.f32 %v1971_v10, %v2220_v47  ;;  %v2000_v10 = vld [vmem:[%s2344_s11 + $0x10] sm:$0xff]  }
  0x37   : > { %1392 = vmatpush.bf16.msrb.mxu1 %v1949_v38  ;;  %v1303_v38 = vshrl.u32 %v1940_v2, 16  ;;  %v979_v53 = vsel %vm633_vm4, %v974_v40, %v978_v43  ;;  %v1127_v2 = vmul.f32 %v1959_v42, %v2322_v45  ;;  %v1978_v32 = vunpack.c.l.bf16 %v2000_v10 }
  0x38   : > { %v1979_v42 = vunpack.c.h.bf16 %v2000_v10 }
  0x39   : > { %870 = vmatpush.bf16.msrb.mxu2 %v1916_v39  ;;  %v1307_v39 = vrot.slane %v1305_v13, 1 }
  0x3a   : > { %1059 = vmatpush.bf16.msrb.mxu3 %v1928_v22  ;;  %1204 = vmatpush.bf16.msrb.mxu0 %v1936_v51  ;;  %v1310_v22 = vshll.u32 %v1941_v12, 16  ;;  %v1126_v51 = vmul.f32 %v1958_v41, %v2220_v47  ;;  %v1942_v47 = vld [vmem:[%s2157_s16 + $0x14] sm:$0xff]  ;;  %v980_v41 = vshrl.u32 %v2372_v3, 16  ;;  %v1128_v3 = vmul.f32 %v1962_v26, %v2325_v46 }
  0x3b   : > { %1393 = vmatpush.bf16.msrb.mxu1 %v1948_v52  ;;  %v799_v52 = vpack.c.bf16 %v792_v36, %v791_v34  ;;  %v992_v26 = vshll.u32 %v1923_v11, 16  ;;  %v796_v13 = vmul.f32 %v1979_v42, %v2187_v30  ;;  %v1322_v14 = vshrl.u32 %v1942_v47, 16 }
  0x3c   : > { %570 = vmatmul.bf16.gmra.mxu2 %v482_v55  ;;  %560 = vmatmul.bf16.gmra.mxu0 %v480_v63  ;;  %v1133_v54 = vpack.c.bf16 %v1126_v51, %v1125_v50  ;;  %v1318_v63 = vshll.u32 %v1942_v47, 16  ;;  %v982_v0 = vor.u32 %v980_v41, %v978_v43  ;;  %v996_v50 = vshrl.u32 %v1923_v11, 16 }
  0x3d   : > { %871 = vmatpush.bf16.msrb.mxu2 %v1915_v27  ;;  %745 = vmatmul.bf16.gmra.mxu3 %v669_v57  ;;  %v1308_v27 = vor.u32 %v1307_v39, %v1303_v38  ;;  %v1922_v57 = vld [vmem:[%s2344_s11 + $0x10] sm:$0xff] }
  0x3e   : > { %1060 = vmatpush.bf16.msrb.mxu3 %v1927_v33  ;;  %1205 = vmatpush.bf16.msrb.mxu0 %v1935_v59  ;;  %v1312_v33 = vrot.slane %v1310_v22, 1  ;;  %v984_v59 = vshll.u32 %v1922_v57, 16  ;;  %v1262_v22 = vld [vmem:[%s2157_s16 + $0x24] sm:$0x1] }
  0x3f   : > { %1394 = vmatpush.bf16.msrb.mxu1 %v1947_v60  ;;  %v793_v60 = vmul.f32 %v1974_v44, %v2322_v45  ;;  %v1943_v45 = vld [vmem:[%s2157_s16 + $0x1c] sm:$0xff] }
  0x40   : > { %735 = vmatmul.bf16.gmra.mxu1 %v653_v1  ;;  %v1313_v55 = vsel %vm633_vm4, %v1308_v27, %v1312_v33  ;;  %v986_v1 = vrot.slane %v984_v59, 1  ;;  %v1326_v15 = vshll.u32 %v1943_v45, 16 }
  0x41   : > { %872 = vmatpush.bf16.msrb.mxu2 %v1914_v61  ;;  %v794_v61 = vmul.f32 %v1975_v58, %v2325_v46  ;;  %v795_v46 = vmul.f32 %v1978_v32, %v2183_v28 }
  0x42   : > { %1061 = vmatpush.bf16.msrb.mxu3 %v1926_v62  ;;  %1206 = vmatpush.bf16.msrb.mxu0 %v1934_v6  ;;  %v1314_v62 = vshrl.u32 %v1941_v12, 16  ;;  %v988_v12 = vshrl.u32 %v1922_v57, 16  ;;  %v1328_v36 = vrot.slane %v1326_v15, 1  ;;  %v1131_v57 = vmul.f32 %v1967_v31, %v2288_v24 }
  0x43   : > { %1395 = vmatpush.bf16.msrb.mxu1 %v1946_v7  ;;  %v800_v4 = vpack.c.bf16 %v794_v61, %v793_v60  ;;  %v1320_v7 = vrot.slane %v1318_v63, 1  ;;  %v801_v34 = vpack.c.bf16 %v796_v13, %v795_v46 }
  0x44   : > { %v1316_v6 = vor.u32 %v1314_v62, %v1312_v33  ;;  %v990_v16 = vor.u32 %v988_v12, %v986_v1 }
  0x45   : > { %873 = vmatpush.bf16.msrb.mxu2 %v1913_v37  ;;  %v987_v37 = vsel %vm633_vm4, %v982_v0, %v986_v1  ;;  %v1324_v35 = vor.u32 %v1322_v14, %v1320_v7 }
  0x46   : > { %1062 = vmatpush.bf16.msrb.mxu3 %v1925_v8  ;;  %1207 = vmatpush.bf16.msrb.mxu0 %v1933_v17  ;;  %v1134_v8 = vpack.c.bf16 %v1128_v3, %v1127_v2  ;;  %v1321_v9 = vsel %vm633_vm4, %v1316_v6, %v1320_v7  ;;  %v994_v17 = vrot.slane %v992_v26, 1 }
  0x47   : > { %1396 = vmatpush.bf16.msrb.mxu1 %v1945_v19  ;;  %v928_v19 = vld [vmem:[%s2344_s11 + $0x20] sm:$0x1]  ;;  %v1329_v43 = vsel %vm633_vm4, %v1324_v35, %v1328_v36 }
  0x48   : > { %v995_v38 = vsel %vm633_vm4, %v990_v16, %v994_v17  ;;  %v962_v39 = vunpack.c.l.b16 %v928_v19 }
  0x49   : > { %874 = vmatpush.bf16.msrb.mxu2 %v1912_v20  ;;  %v1129_v20 = vmul.f32 %v1963_v29, %v2183_v28  ;;  %v1982_v29 = vunpack.c.l.bf16 %v2001_v18 }
  0x4a   : > { %1063 = vmatpush.bf16.msrb.mxu3 %v1924_v21  ;;  %1208 = vmatpush.bf16.msrb.mxu0 %v1932_v48  ;;  %v1130_v21 = vmul.f32 %v1966_v23, %v2187_v30  ;;  %v1296_v48 = vunpack.c.l.b16 %v1262_v22  ;;  %v967_v28 = vpack.c.b16 %v962_v39, %v962_v39  ;;  %v1983_v30 = vunpack.c.h.bf16 %v2001_v18  ;;  %v1116_v23 = vld [vmem:[%s2157_s16 + $0x20] sm:$0xf] }
  0x4b   : > { %1397 = vmatpush.bf16.msrb.mxu1 %v1944_v49  ;;  %v797_v27 = vmul.f32 %v1982_v29, %v2288_v24 }
  0x4c   : > { %875 = vmatmul.bf16.vlgmr.msrb.gmra.mxu2 %v799_v52  ;;  %v1135_v40 = vpack.c.bf16 %v1130_v21, %v1129_v20  ;;  %v1301_v49 = vpack.c.b16 %v1296_v48, %v1296_v48  ;;  %v1000_v51 = vshll.u32 %v967_v28, 16  ;;  %v1124_v52 = vunpack.c.l.bf16 %v1116_v23 }
  0x4d   : > { %1064 = vmatmul.bf16.vlgmr.msrb.gmra.mxu3 %v979_v53  ;;  %1209 = vmatmul.bf16.vlgmr.msrb.gmra.mxu0 %v1133_v54  ;;  %v798_v33 = vmul.f32 %v1983_v30, %v2293_v25  ;;  %v1330_v53 = vshrl.u32 %v1943_v45, 16 }
  0x4e   : > { %v1334_v54 = vshll.u32 %v1301_v49, 16  ;;  %v1002_v56 = vrot.slane %v1000_v51, 1  ;;  %v1132_v44 = vmul.f32 %v2293_v25, %v1124_v52 }
  0x4f   : > { %v802_v58 = vpack.c.bf16 %v798_v33, %v797_v27  ;;  %v1332_v47 = vor.u32 %v1330_v53, %v1328_v36 }
  0x50   : > { %1398 = vmatmul.bf16.vlgmr.msrb.gmra.mxu1 %v1313_v55  ;;  %v998_v55 = vor.u32 %v996_v50, %v994_v17  ;;  %v1336_v41 = vrot.slane %v1334_v54, 1  ;;  %v1136_v60 = vpack.c.bf16 %v1132_v44, %v1131_v57 }
  0x52   : > { %v1003_v59 = vsel %vm633_vm4, %v998_v55, %v1002_v56  ;;  %v1337_v61 = vsel %vm633_vm4, %v1332_v47, %v1336_v41 }
  0x5c   : > { %880 = vmatmul.bf16.gmra.mxu2 %v800_v4 }
  0x5d   : > { %1069 = vmatmul.bf16.gmra.mxu3 %v987_v37  ;;  %1214 = vmatmul.bf16.gmra.mxu0 %v1134_v8 }
  0x60   : > { %1403 = vmatmul.bf16.gmra.mxu1 %v1321_v9 }
  0x6c   : > { %885 = vmatmul.bf16.gmra.mxu2 %v801_v34 }
  0x6d   : > { %1074 = vmatmul.bf16.gmra.mxu3 %v995_v38  ;;  %1219 = vmatmul.bf16.gmra.mxu0 %v1135_v40 }
  0x70   : > { %1408 = vmatmul.bf16.gmra.mxu1 %v1329_v43 }
  0x7c   : > { %890 = vmatmul.bf16.gmra.mxu2 %v802_v58 }
  0x7d   : > { %1079 = vmatmul.bf16.gmra.mxu3 %v1003_v59  ;;  %1224 = vmatmul.bf16.gmra.mxu0 %v1136_v60 }
  0x80   : > { %1413 = vmatmul.bf16.gmra.mxu1 %v1337_v61 }
  0xa9   : > { %v556_v62 = vpop.f32.mrf.mxu0 }
  0xaa   : > { %577 = vst.msk [vmem:[#allocation2] sm:$0xff] %vm576_vm9, %v556_v62 }
  0xad   : > { %v731_v63 = vpop.f32.mrf.mxu1 }
  0xaf   : > { %v566_v5 = vpop.f32.mrf.mxu2 }
  0xb0   : > { %v741_v24 = vpop.f32.mrf.mxu3  ;;  %581 = vst.msk [vmem:[#allocation2 + $0x20] sm:$0xff] %vm576_vm9, %v566_v5 }
  0xb1   : > { %v558_v25 = vpop.f32.mrf.mxu0  ;;  %v751_v31 = vld [vmem:[#allocation2] sm:$0xff] }
  0xb2   : > { %578 = vst.msk [vmem:[#allocation2 + $0x8] sm:$0xff] %vm576_vm9, %v558_v25  ;;  %v759_v0 = vadd.f32 %v751_v31, %v731_v63 }
  0xb4   : > { %767 = vst.msk [vmem:[#allocation2] sm:$0xff] %vm576_vm9, %v759_v0 }
  0xb5   : > { %v733_v1 = vpop.f32.mrf.mxu1 }
  0xb7   : > { %v755_v2 = vld [vmem:[#allocation2 + $0x20] sm:$0xff]  ;;  %v568_v3 = vpop.f32.mrf.mxu2 }
  0xb8   : > { %v743_v4 = vpop.f32.mrf.mxu3  ;;  %v763_v6 = vadd.f32 %v755_v2, %v741_v24  ;;  %582 = vst.msk [vmem:[#allocation2 + $0x28] sm:$0xff] %vm576_vm9, %v568_v3 }
  0xb9   : > { %v561_v7 = vpop.f32.mrf.mxu0  ;;  %v752_v37 = vld [vmem:[#allocation2 + $0x8] sm:$0xff] }
  0xba   : > { %771 = vst.msk [vmem:[#allocation2 + $0x20] sm:$0xff] %vm576_vm9, %v763_v6  ;;  %v760_v8 = vadd.f32 %v752_v37, %v733_v1  ;;  %v2485_v6 = vld [vmem:[%s2562_s3] ss:$0 sm:$0xff] }
  0xbb   : > { %579 = vst.msk [vmem:[#allocation2 + $0x10] sm:$0xff] %vm576_vm9, %v561_v7  ;;  %v896_v19 = vld [vmem:[#allocation2] sm:$0xff] }
  0xbc   : > { %768 = vst.msk [vmem:[#allocation2 + $0x8] sm:$0xff] %vm576_vm9, %v760_v8  ;;  %v2491_v8 = vld [vmem:[%s2563_s4] ss:$0 sm:$0xff] }
  0xbd   : > { %v736_v42 = vpop.f32.mrf.mxu1 }
  0xbf   : > { %v756_v9 = vld [vmem:[#allocation2 + $0x28] sm:$0xff]  ;;  %v571_v10 = vpop.f32.mrf.mxu2 }
  0xc0   : > { %v746_v11 = vpop.f32.mrf.mxu3  ;;  %v764_v32 = vadd.f32 %v756_v9, %v743_v4  ;;  %583 = vst.msk [vmem:[#allocation2 + $0x30] sm:$0xff] %vm576_vm9, %v571_v10 }
  0xc1   : > { %v563_v45 = vpop.f32.mrf.mxu0  ;;  %v900_v5 = vld [vmem:[#allocation2 + $0x20] sm:$0xff] }
  0xc2   : > { %772 = vst.msk [vmem:[#allocation2 + $0x28] sm:$0xff] %vm576_vm9, %v764_v32  ;;  %v753_v12 = vld [vmem:[#allocation2 + $0x10] sm:$0xff] }
  0xc3   : > { %580 = vst.msk [vmem:[#allocation2 + $0x18] sm:$0xff] %vm576_vm9, %v563_v45  ;;  %v761_v26 = vadd.f32 %v753_v12, %v736_v42  ;;  %v897_v40 = vld [vmem:[#allocation2 + $0x8] sm:$0xff] }
  0xc5   : > { %769 = vst.msk [vmem:[#allocation2 + $0x10] sm:$0xff] %vm576_vm9, %v761_v26  ;;  %v738_v16 = vpop.f32.mrf.mxu1 }
  0xc7   : > { %v757_v46 = vld [vmem:[#allocation2 + $0x30] sm:$0xff]  ;;  %v573_v13 = vpop.f32.mrf.mxu2 }
  0xc8   : > { %v748_v14 = vpop.f32.mrf.mxu3  ;;  %v765_v15 = vadd.f32 %v757_v46, %v746_v11  ;;  %584 = vst.msk [vmem:[#allocation2 + $0x38] sm:$0xff] %vm576_vm9, %v573_v13 }
  0xc9   : > { %v901_v10 = vld [vmem:[#allocation2 + $0x28] sm:$0xff] }
  0xca   : > { %773 = vst.msk [vmem:[#allocation2 + $0x30] sm:$0xff] %vm576_vm9, %v765_v15  ;;  %v754_v17 = vld [vmem:[#allocation2 + $0x18] sm:$0xff]  ;;  %v1210_v39 = vpop.f32.mrf.mxu0 }
  0xcb   : > { %v762_v20 = vadd.f32 %v754_v17, %v738_v16 }
  0xcc   : > { %v898_v29 = vld [vmem:[#allocation2 + $0x10] sm:$0xff] }
  0xcd   : > { %770 = vst.msk [vmem:[#allocation2 + $0x18] sm:$0xff] %vm576_vm9, %v762_v20  ;;  %v1399_v23 = vpop.f32.mrf.mxu1 }
  0xcf   : > { %v758_v21 = vld [vmem:[#allocation2 + $0x38] sm:$0xff]  ;;  %v876_v34 = vpop.f32.mrf.mxu2 }
  0xd0   : > { %v1065_v35 = vpop.f32.mrf.mxu3  ;;  %v766_v36 = vadd.f32 %v758_v21, %v748_v14  ;;  %v904_v38 = vadd.f32 %v896_v19, %v876_v34 }
  0xd2   : > { %774 = vst.msk [vmem:[#allocation2 + $0x38] sm:$0xff] %vm576_vm9, %v766_v36  ;;  %v1212_v30 = vpop.f32.mrf.mxu0  ;;  %v902_v36 = vld [vmem:[#allocation2 + $0x30] sm:$0xff] }
  0xd3   : > { %912 = vst.msk [vmem:[#allocation2] sm:$0xff] %vm576_vm9, %v904_v38 }
  0xd4   : > { %v899_v55 = vld [vmem:[#allocation2 + $0x18] sm:$0xff] }
  0xd5   : > { %v1401_v44 = vpop.f32.mrf.mxu1 }
  0xd7   : > { %v878_v22 = vpop.f32.mrf.mxu2 }
  0xd8   : > { %v1067_v43 = vpop.f32.mrf.mxu3  ;;  %v905_v48 = vadd.f32 %v897_v40, %v878_v22 }
  0xda   : > { %v1085_v18 = vld [vmem:[#allocation2] sm:$0xff]  ;;  %913 = vst.msk [vmem:[#allocation2 + $0x8] sm:$0xff] %vm576_vm9, %v905_v48  ;;  %v1215_v57 = vpop.f32.mrf.mxu0 }
  0xdb   : > { %v1093_v28 = vadd.f32 %v1085_v18, %v1065_v35 }
  0xdd   : > { %1101 = vst.msk [vmem:[#allocation2] sm:$0xff] %vm576_vm9, %v1093_v28  ;;  %v1404_v1 = vpop.f32.mrf.mxu1 }
  0xdf   : > { %v881_v49 = vpop.f32.mrf.mxu2 }
  0xe0   : > { %v1070_v50 = vpop.f32.mrf.mxu3  ;;  %v906_v51 = vadd.f32 %v898_v29, %v881_v49 }
  0xe1   : > { %v1086_v52 = vld [vmem:[#allocation2 + $0x8] sm:$0xff] }
  0xe2   : > { %v1094_v27 = vadd.f32 %v1086_v52, %v1067_v43  ;;  %914 = vst.msk [vmem:[#allocation2 + $0x10] sm:$0xff] %vm576_vm9, %v906_v51  ;;  %v1217_v0 = vpop.f32.mrf.mxu0 }
  0xe4   : > { %1102 = vst.msk [vmem:[#allocation2 + $0x8] sm:$0xff] %vm576_vm9, %v1094_v27  ;;  %v1230_v33 = vld [vmem:[#allocation2] sm:$0xff] }
  0xe5   : > { %v1238_v53 = vadd.f32 %v1230_v33, %v1210_v39  ;;  %v1406_v15 = vpop.f32.mrf.mxu1  ;;  %v903_v33 = vld [vmem:[#allocation2 + $0x38] sm:$0xff] }
  0xe7   : > { %1246 = vst.msk [vmem:[#allocation2] sm:$0xff] %vm576_vm9, %v1238_v53  ;;  %v883_v54 = vpop.f32.mrf.mxu2 }
  0xe8   : > { %v907_v56 = vadd.f32 %v899_v55, %v883_v54  ;;  %v1072_v47 = vpop.f32.mrf.mxu3 }
  0xe9   : > { %v1087_v58 = vld [vmem:[#allocation2 + $0x10] sm:$0xff] }
  0xea   : > { %v1095_v41 = vadd.f32 %v1087_v58, %v1070_v50  ;;  %915 = vst.msk [vmem:[#allocation2 + $0x18] sm:$0xff] %vm576_vm9, %v907_v56  ;;  %v1220_v14 = vpop.f32.mrf.mxu0 }
  0xeb   : > { %v1231_v59 = vld [vmem:[#allocation2 + $0x8] sm:$0xff] }
  0xec   : > { %1103 = vst.msk [vmem:[#allocation2 + $0x10] sm:$0xff] %vm576_vm9, %v1095_v41  ;;  %v1239_v60 = vadd.f32 %v1231_v59, %v1212_v30 }
  0xed   : > { %v1409_v50 = vpop.f32.mrf.mxu1 }
  0xee   : > { %1247 = vst.msk [vmem:[#allocation2 + $0x8] sm:$0xff] %vm576_vm9, %v1239_v60  ;;  %v1419_v61 = vld [vmem:[#allocation2] sm:$0xff] }
  0xef   : > { %v1427_v62 = vadd.f32 %v1419_v61, %v1399_v23  ;;  %v886_v63 = vpop.f32.mrf.mxu2 }
  0xf0   : > { %v908_v24 = vadd.f32 %v900_v5, %v886_v63  ;;  %v1075_v3 = vpop.f32.mrf.mxu3 }
  0xf1   : > { %1435 = vst.msk [vmem:[#allocation2] sm:$0xff] %vm576_vm9, %v1427_v62  ;;  %v1088_v25 = vld [vmem:[#allocation2 + $0x18] sm:$0xff] }
  0xf2   : > { %v1096_v31 = vadd.f32 %v1088_v25, %v1072_v47  ;;  %916 = vst.msk [vmem:[#allocation2 + $0x20] sm:$0xff] %vm576_vm9, %v908_v24  ;;  %v1222_v49 = vpop.f32.mrf.mxu0 }
  0xf3   : > { %v1232_v2 = vld [vmem:[#allocation2 + $0x10] sm:$0xff] }
  0xf4   : > { %1104 = vst.msk [vmem:[#allocation2 + $0x18] sm:$0xff] %vm576_vm9, %v1096_v31  ;;  %v1240_v4 = vadd.f32 %v1232_v2, %v1215_v57 }
  0xf5   : > { %v1420_v7 = vld [vmem:[#allocation2 + $0x8] sm:$0xff]  ;;  %v1411_v62 = vpop.f32.mrf.mxu1 }
  0xf6   : > { %1248 = vst.msk [vmem:[#allocation2 + $0x10] sm:$0xff] %vm576_vm9, %v1240_v4  ;;  %v1428_v37 = vadd.f32 %v1420_v7, %v1401_v44 }
  0xf7   : > { %v888_v9 = vpop.f32.mrf.mxu2 }
  0xf8   : > { %v1443_v11 = vld [vmem:[#allocation2] sm:$0xff]  ;;  %1436 = vst.msk [vmem:[#allocation2 + $0x8] sm:$0xff] %vm576_vm9, %v1428_v37  ;;  %v909_v32 = vadd.f32 %v901_v10, %v888_v9  ;;  %v1077_v19 = vpop.f32.mrf.mxu3 }
  0xf9   : > { %v1455_v42 = vmul.f32 %v2485_v6, %v1443_v11  ;;  %v1089_v45 = vld [vmem:[#allocation2 + $0x20] sm:$0xff] }
  0xfa   : > { %v1097_v12 = vadd.f32 %v1089_v45, %v1075_v3  ;;  %917 = vst.msk [vmem:[#allocation2 + $0x28] sm:$0xff] %vm576_vm9, %v909_v32  ;;  %v1225_v25 = vpop.f32.mrf.mxu0 }
  0xfb   : > { %v1467_v26 = vadd.f32 %v2491_v8, %v1455_v42  ;;  %v1233_v46 = vld [vmem:[#allocation2 + $0x18] sm:$0xff] }
  0xfc   : > { %1105 = vst.msk [vmem:[#allocation2 + $0x20] sm:$0xff] %vm576_vm9, %v1097_v12  ;;  %v1241_v13 = vadd.f32 %v1233_v46, %v1217_v0 }
  0xfd   : > { %v1475_v16 = vmax.f32 %v1467_v26, 0.0  ;;  %v1421_v17 = vld [vmem:[#allocation2 + $0x10] sm:$0xff]  ;;  %v1414_v45 = vpop.f32.mrf.mxu1 }
  0xfe   : > { %1249 = vst.msk [vmem:[#allocation2 + $0x18] sm:$0xff] %vm576_vm9, %v1241_v13  ;;  %v1429_v20 = vadd.f32 %v1421_v17, %v1404_v1 }
  0xff   : > { %v1483_v21 = vpack.c.bf16 %v1475_v16, %v1475_v16  ;;  %v1444_v34 = vld [vmem:[#allocation2 + $0x8] sm:$0xff]  ;;  %v891_v35 = vpop.f32.mrf.mxu2 }
 0x100   : > { %v1456_v38 = vmul.f32 %v2485_v6, %v1444_v34  ;;  %1437 = vst.msk [vmem:[#allocation2 + $0x10] sm:$0xff] %vm576_vm9, %v1429_v20  ;;  %v910_v39 = vadd.f32 %v902_v36, %v891_v35  ;;  %v1080_v52 = vpop.f32.mrf.mxu3 }
 0x101   : > { %1492 = vst.msk [vmem:[%s2502_s6] sm:$0xf] %vm1491_vm10, %v1483_v21  ;;  %v1090_v22 = vld [vmem:[#allocation2 + $0x28] sm:$0xff] }
 0x102   : > { %v1468_v40 = vadd.f32 %v2491_v8, %v1456_v38  ;;  %v1098_v43 = vadd.f32 %v1090_v22, %v1077_v19  ;;  %918 = vst.msk [vmem:[#allocation2 + $0x30] sm:$0xff] %vm576_vm9, %v910_v39  ;;  %v1227_v32 = vpop.f32.mrf.mxu0 }
 0x103   : > { %v1234_v48 = vld [vmem:[#allocation2 + $0x20] sm:$0xff] }
 0x104   : > { %v1476_v18 = vmax.f32 %v1468_v40, 0.0  ;;  %1106 = vst.msk [vmem:[#allocation2 + $0x28] sm:$0xff] %vm576_vm9, %v1098_v43  ;;  %v1242_v28 = vadd.f32 %v1234_v48, %v1220_v14 }
 0x105   : > { %v1422_v29 = vld [vmem:[#allocation2 + $0x18] sm:$0xff]  ;;  %v1416_v20 = vpop.f32.mrf.mxu1 }
 0x106   : > { %v1484_v30 = vpack.c.bf16 %v1476_v18, %v1476_v18  ;;  %1250 = vst.msk [vmem:[#allocation2 + $0x20] sm:$0xff] %vm576_vm9, %v1242_v28  ;;  %v1430_v23 = vadd.f32 %v1422_v29, %v1406_v15 }
 0x107   : > { %v1445_v51 = vld [vmem:[#allocation2 + $0x10] sm:$0xff]  ;;  %v893_v27 = vpop.f32.mrf.mxu2 }
 0x108   : > { %1493 = vst.msk [vmem:[%s2502_s6 + $0x4] sm:$0xf] %vm1491_vm10, %v1484_v30  ;;  %v1457_v53 = vmul.f32 %v2485_v6, %v1445_v51  ;;  %v911_v54 = vadd.f32 %v903_v33, %v893_v27  ;;  %v1082_v5 = vpop.f32.mrf.mxu3 }
 0x109   : > { %1438 = vst.msk [vmem:[#allocation2 + $0x18] sm:$0xff] %vm576_vm9, %v1430_v23  ;;  %v1091_v55 = vld [vmem:[#allocation2 + $0x30] sm:$0xff] }
 0x10a   : > { %v1469_v56 = vadd.f32 %v2491_v8, %v1457_v53  ;;  %v1099_v57 = vadd.f32 %v1091_v55, %v1080_v52  ;;  %919 = vst.msk [vmem:[#allocation2 + $0x38] sm:$0xff] %vm576_vm9, %v911_v54 }
 0x10b   : > { %v1235_v44 = vld [vmem:[#allocation2 + $0x28] sm:$0xff] }
 0x10c   : > { %v1477_v58 = vmax.f32 %v1469_v56, 0.0  ;;  %1107 = vst.msk [vmem:[#allocation2 + $0x30] sm:$0xff] %vm576_vm9, %v1099_v57  ;;  %v1243_v47 = vadd.f32 %v1235_v44, %v1222_v49 }
 0x10d   : > { %v1423_v41 = vld [vmem:[#allocation2 + $0x20] sm:$0xff] }
 0x10e   : > { %v1485_v59 = vpack.c.bf16 %v1477_v58, %v1477_v58  ;;  %1251 = vst.msk [vmem:[#allocation2 + $0x28] sm:$0xff] %vm576_vm9, %v1243_v47  ;;  %v1431_v60 = vadd.f32 %v1423_v41, %v1409_v50 }
 0x110   : > { %1494 = vst.msk [vmem:[%s2502_s6 + $0x8] sm:$0xf] %vm1491_vm10, %v1485_v59  ;;  %v1446_v61 = vld [vmem:[#allocation2 + $0x18] sm:$0xff] }
 0x111   : > { %v1458_v63 = vmul.f32 %v2485_v6, %v1446_v61  ;;  %1439 = vst.msk [vmem:[#allocation2 + $0x20] sm:$0xff] %vm576_vm9, %v1431_v60  ;;  %v1092_v24 = vld [vmem:[#allocation2 + $0x38] sm:$0xff] }
 0x112   : > { %v1100_v31 = vadd.f32 %v1092_v24, %v1082_v5 }
 0x113   : > { %v1470_v0 = vadd.f32 %v2491_v8, %v1458_v63  ;;  %v1236_v1 = vld [vmem:[#allocation2 + $0x30] sm:$0xff] }
 0x114   : > { %1108 = vst.msk [vmem:[#allocation2 + $0x38] sm:$0xff] %vm576_vm9, %v1100_v31  ;;  %v1244_v2 = vadd.f32 %v1236_v1, %v1225_v25 }
 0x115   : > { %v1478_v3 = vmax.f32 %v1470_v0, 0.0  ;;  %v1424_v4 = vld [vmem:[#allocation2 + $0x28] sm:$0xff] }
 0x116   : > { %1252 = vst.msk [vmem:[#allocation2 + $0x30] sm:$0xff] %vm576_vm9, %v1244_v2  ;;  %v1432_v7 = vadd.f32 %v1424_v4, %v1411_v62 }
 0x117   : > { %v1486_v37 = vpack.c.bf16 %v1478_v3, %v1478_v3 }
 0x118   : > { %v1447_v9 = vld [vmem:[#allocation2 + $0x20] sm:$0xff]  ;;  %1440 = vst.msk [vmem:[#allocation2 + $0x28] sm:$0xff] %vm576_vm9, %v1432_v7 }
 0x119   : > { %1495 = vst.msk [vmem:[%s2502_s6 + $0xc] sm:$0xf] %vm1491_vm10, %v1486_v37  ;;  %v1459_v10 = vmul.f32 %v2485_v6, %v1447_v9 }
 0x11b   : > { %v1471_v11 = vadd.f32 %v2491_v8, %v1459_v10  ;;  %v1237_v42 = vld [vmem:[#allocation2 + $0x38] sm:$0xff] }
 0x11c   : > { %v1245_v12 = vadd.f32 %v1237_v42, %v1227_v32 }
 0x11d   : > { %v1479_v26 = vmax.f32 %v1471_v11, 0.0  ;;  %v1425_v46 = vld [vmem:[#allocation2 + $0x30] sm:$0xff] }
 0x11e   : > { %1253 = vst.msk [vmem:[#allocation2 + $0x38] sm:$0xff] %vm576_vm9, %v1245_v12  ;;  %v1433_v13 = vadd.f32 %v1425_v46, %v1414_v45 }
 0x11f   : > { %v1487_v14 = vpack.c.bf16 %v1479_v26, %v1479_v26  ;;  %v1448_v15 = vld [vmem:[#allocation2 + $0x28] sm:$0xff] }
 0x120   : > { %v1460_v16 = vmul.f32 %v2485_v6, %v1448_v15  ;;  %1441 = vst.msk [vmem:[#allocation2 + $0x30] sm:$0xff] %vm576_vm9, %v1433_v13 }
 0x121   : > { %1496 = vst.msk [vmem:[%s2502_s6 + $0x10] sm:$0xf] %vm1491_vm10, %v1487_v14 }
 0x122   : > { %v1472_v17 = vadd.f32 %v2491_v8, %v1460_v16 }
 0x124   : > { %v1480_v19 = vmax.f32 %v1472_v17, 0.0 }
 0x125   : > { %v1426_v21 = vld [vmem:[#allocation2 + $0x38] sm:$0xff] }
 0x126   : > { %v1488_v34 = vpack.c.bf16 %v1480_v19, %v1480_v19  ;;  %v1434_v35 = vadd.f32 %v1426_v21, %v1416_v20 }
 0x127   : > { %v1449_v36 = vld [vmem:[#allocation2 + $0x30] sm:$0xff] }
 0x128   : > { %1497 = vst.msk [vmem:[%s2502_s6 + $0x14] sm:$0xf] %vm1491_vm10, %v1488_v34  ;;  %v1461_v38 = vmul.f32 %v2485_v6, %v1449_v36 }
 0x129   : > { %1442 = vst.msk [vmem:[#allocation2 + $0x38] sm:$0xff] %vm576_vm9, %v1434_v35 }
 0x12a   : > { %v1473_v39 = vadd.f32 %v2491_v8, %v1461_v38 }
 0x12c   : > { %v1481_v22 = vmax.f32 %v1473_v39, 0.0 }
 0x12e   : > { %v1489_v40 = vpack.c.bf16 %v1481_v22, %v1481_v22 }
 0x130   : > { %1498 = vst.msk [vmem:[%s2502_s6 + $0x18] sm:$0xf] %vm1491_vm10, %v1489_v40  ;;  %v1450_v43 = vld [vmem:[#allocation2 + $0x38] sm:$0xff] }
 0x131   : > { %v1462_v48 = vmul.f32 %v2485_v6, %v1450_v43 }
 0x133   : > { %v1474_v18 = vadd.f32 %v2491_v8, %v1462_v48 }
 0x135   : > { %v1482_v28 = vmax.f32 %v1474_v18, 0.0 }
 0x137   : > { %v1490_v29 = vpack.c.bf16 %v1482_v28, %v1482_v28 }
 0x139   : > { %1499 = vst.msk [vmem:[%s2502_s6 + $0x1c] sm:$0xf] %vm1491_vm10, %v1490_v29 }
 0x13a PF: > { %s15_s20 = sadd.s32 1, %s2072_s20   ;;  %s2571_s18 = smov %s2068_s19 }
 0x13b   : > { %p12_p5 = scmp.ge.s32.totalorder %s15_s20, 4   ;;  %s2572_s19 = smov %s2574_s21 }
 0x13d   :  { %14 = sbr.rel (!%p12_p5) target bundleno = 2 (0x2), region = 82 }

</bundles_post_ra>
